<compile_context>
chip_gen: v5e
topology: v5e:2x2
jax: 0.10.0
libtpu: 0.0.40
codegen_flags: <defaults>
</compile_context>

<pallas_src>
import functools

import jax
import jax.numpy as jnp
from jax.experimental import pallas as pl
from jax.experimental.pallas import tpu as pltpu


def _round_up(x, m):
    return (x + m - 1) // m * m


def _vmem_params():
    """Generation-aware (vmem_budget, vmem_limit): v7x 64 MiB/TC, v5e/v6e 128 MiB."""
    try:
        cap = pltpu.get_tpu_info().vmem_capacity_bytes
    except Exception:
        cap = 64 * 1024 * 1024                       # conservative (v7x-sized) fallback
    budget = max(16 << 20, cap // 2 - (8 << 20))     # ~24 MiB v7x, ~56 MiB v5e/v6e
    limit = min(cap - (16 << 20), 100 << 20)         # ~48 MiB v7x, ~100 MiB v5e/v6e
    return budget, limit


# ----------------------------------------------------------------------------
# Small-codebook path (VPU, channel-first, sublane/lane-dense spatial tiles).
# ----------------------------------------------------------------------------
def _vq_vpu_kernel(e_ref, em2_ref, e2_ref, x_ref, q_ref, idx_ref, *,
                   num_embeddings, embedding_dim):
    """e_ref/em2_ref: [K*C] f32 SMEM (codebook / -2*codebook, flattened 1-D);
    e2_ref: [K] f32 SMEM (||e_k||^2);
    x_ref/q_ref: [1, C, SUB, 128] f32 VMEM; idx_ref: [1, SUB, 128] i32 VMEM."""
    K, C = num_embeddings, embedding_dim
    xt = x_ref[0]                               # [C, SUB, 128]
    xc = [xt[c] for c in range(C)]              # each [SUB, 128]: full, dense vregs

    def score(k):
        # ||e_k||^2 - 2<e_k, x>;  ||x||^2 is per-position constant -> dropped.
        acc = em2_ref[k * C] * xc[0]
        for ch in range(1, C):
            acc = acc + em2_ref[k * C + ch] * xc[ch]
        return acc + e2_ref[k]

    best_score = score(0)
    best_idx = jnp.zeros(best_score.shape, dtype=jnp.int32)
    q_rows = [jnp.zeros_like(best_score) + e_ref[ch] for ch in range(C)]

    for k in range(1, K):
        s_k = score(k)
        # Strict "<" keeps the first (lowest) index on exact ties, matching
        # torch.max(-distances, dim=1)[1] first-occurrence behaviour.
        better = s_k < best_score
        best_score = jnp.where(better, s_k, best_score)
        best_idx = jnp.where(better, k, best_idx)
        for ch in range(C):
            q_rows[ch] = jnp.where(better, e_ref[k * C + ch], q_rows[ch])

    # Single dense stores (unmasked vst): [C, SUB, 128] and [SUB, 128].
    q_ref[...] = jnp.stack(q_rows, axis=0)[None]
    idx_ref[...] = best_idx[None]


def _vq_pallas_small(x3, codebook, *, tile_spatial=16384):
    """x3: [B, C, S] channel-first f32.  Returns (q3 [B,C,S], idx [B,S] i32)."""
    b, c, s = x3.shape
    k = codebook.shape[0]
    _, vmem_limit = _vmem_params()

    # Spatial tiling: tiles are either the whole (128-padded) extent or a multiple
    # of 1024 positions so the (SUB, 128) block stays (8,128)-aligned.
    s128 = _round_up(s, 128)
    t = s128 if s128 <= tile_spatial else tile_spatial
    s_pad = _round_up(s, t)
    # v7x megacore: split a would-be single-step grid (b == 1) into two tiles.
    if b == 1 and s_pad // t == 1 and s128 >= 2048:
        s_pad = _round_up(s128, 2048)
        t = s_pad // 2                             # multiple of 1024
    if s_pad != s:
        x3 = jnp.pad(x3, ((0, 0), (0, 0), (0, s_pad - s)))
    sub = t // 128
    x4 = x3.reshape(b, c, s_pad // 128, 128)       # layout-preserving (free) reshape

    # Codebook tables hoisted out of the grid loop; 1-D SMEM avoids 2-D SMEM padding.
    e_flat = codebook.reshape(-1)
    em2_flat = (-2.0 * codebook).reshape(-1)
    e2 = jnp.sum(codebook * codebook, axis=1)

    kernel = functools.partial(_vq_vpu_kernel, num_embeddings=k, embedding_dim=c)
    smem = pl.BlockSpec(memory_space=pltpu.MemorySpace.SMEM)
    q4, idx4 = pl.pallas_call(
        kernel,
        out_shape=(jax.ShapeDtypeStruct((b, c, s_pad // 128, 128), jnp.float32),
                   jax.ShapeDtypeStruct((b, s_pad // 128, 128), jnp.int32)),
        grid=(b, s_pad // t),
        in_specs=[smem, smem, smem,
                  pl.BlockSpec((1, c, sub, 128), lambda bi, si: (bi, 0, si, 0))],
        out_specs=(pl.BlockSpec((1, c, sub, 128), lambda bi, si: (bi, 0, si, 0)),
                   pl.BlockSpec((1, sub, 128), lambda bi, si: (bi, si, 0))),
        compiler_params=pltpu.CompilerParams(
            dimension_semantics=("parallel", "parallel"),
            vmem_limit_bytes=vmem_limit),
    )(e_flat, em2_flat, e2, x4)
    q3 = q4.reshape(b, c, s_pad)[:, :, :s]
    idx2 = idx4.reshape(b, s_pad)[:, :s]
    return q3, idx2


# ----------------------------------------------------------------------------
# General MXU path (large embedding_dim / num_embeddings): indices only.
# ----------------------------------------------------------------------------
def _vq_mxu_kernel(em2_ref, e2_ref, x_ref, idx_ref):
    """em2_ref [K_pad, D] = -2*E; e2_ref [K_pad, 1] = ||E||^2 (pads = 3e38);
    x_ref [1, D, TM] channel-first tile; idx_ref [1, TM] i32."""
    x = x_ref[0]                                                     # [D, TM]
    # Single MXU matmul per tile (the one-hot gather matmul was removed — the
    # exact codebook-row gather now happens in the wrapper).  HIGHEST keeps the
    # argmin close to an exact-f32 reference and still costs less MXU time than
    # the old default-distance + HIGHEST-gather pair.
    score = jnp.dot(em2_ref[...], x, preferred_element_type=jnp.float32,
                    precision=jax.lax.Precision.HIGHEST)
    score = score + e2_ref[...]                                      # [K_pad, TM]
    k_pad = score.shape[0]
    best = jnp.min(score, axis=0, keepdims=True)                     # [1, TM]
    iota_k = jax.lax.broadcasted_iota(jnp.int32, score.shape, 0)
    # First-occurrence index on ties (matches torch.max(-d, dim=1)[1]).
    idx = jnp.min(jnp.where(score <= best, iota_k, k_pad), axis=0, keepdims=True)
    idx_ref[...] = idx


def _pick_spatial_tile(s, d, k_pad, budget, tm_max=8192):
    """Largest spatial tile (multiple of 128) whose VMEM footprint fits `budget`."""
    s128 = _round_up(s, 128)
    cap = min(tm_max, s128)
    fixed = 2 * (k_pad * d + k_pad) * 4             # codebook tables (double-buffered)
    per_col = 2 * d * 4 + 2 * 4 + 3 * k_pad * 4     # x/idx (double-buffered) + [K,TM] temps
    tm = (budget - fixed) // per_col
    return max(128, min(cap, tm // 128 * 128))


def _vq_pallas_mxu(x3, codebook):
    """x3: [B, C, S] channel-first f32; codebook [K, C].  Returns idx [B, S] i32."""
    b, d, s = x3.shape
    k = codebook.shape[0]
    budget, vmem_limit = _vmem_params()
    k_pad = _round_up(k, 8)                          # K lives on sublanes of the score
    tm = _pick_spatial_tile(s, d, k_pad, budget)
    # v7x megacore: prefer >= 2 grid steps along a parallel axis.
    if b == 1 and s > 128 and _round_up(s, tm) // tm == 1:
        tm = max(128, _round_up((s + 1) // 2, 128))
    s_pad = _round_up(s, tm)
    if s_pad != s:
        x3 = jnp.pad(x3, ((0, 0), (0, 0), (0, s_pad - s)))

    # Hoisted codebook tables: score = (-2 E) @ x + ||E||^2 (||x||^2 dropped —
    # per-position constant, argmin-invariant).  Padded codebook rows get a huge
    # ||e||^2 so the argmin can never select a pad row.
    em2 = jnp.zeros((k_pad, d), jnp.float32).at[:k].set(-2.0 * codebook)
    e2 = jnp.full((k_pad, 1), 3.0e38, jnp.float32).at[:k, 0].set(
        jnp.sum(codebook * codebook, axis=1))

    idx_p = pl.pallas_call(
        _vq_mxu_kernel,
        out_shape=jax.ShapeDtypeStruct((b, s_pad), jnp.int32),
        grid=(b, s_pad // tm),
        in_specs=[pl.BlockSpec((k_pad, d), lambda bi, si: (0, 0)),
                  pl.BlockSpec((k_pad, 1), lambda bi, si: (0, 0)),
                  pl.BlockSpec((1, d, tm), lambda bi, si: (bi, 0, si))],
        out_specs=pl.BlockSpec((1, tm), lambda bi, si: (bi, si)),
        compiler_params=pltpu.CompilerParams(
            dimension_semantics=("parallel", "parallel"),
            vmem_limit_bytes=vmem_limit),
    )(em2, e2, x3)
    # TODO(synk): for very large num_embeddings add an "arbitrary" grid axis over
    # codebook chunks with a running (min, argmin) carried in VMEM scratch so the
    # [K_pad, TM] score stays bounded and TM stays large on all generations.
    return idx_p[:, :s]


# ----------------------------------------------------------------------------
# Module forward (eval-mode semantics of VectorQuantizer(EMAQuantizer)).
# ----------------------------------------------------------------------------
@jax.jit
def vector_quantizer_forward(inputs, codebook, commitment_cost=0.25):
    """inputs: [B, C, *spatial] channel-first; codebook: [K, C].

    Returns (loss, quantized, encoding_indices, perplexity): loss/quantized are
    the module's return values; encoding_indices / perplexity mirror its internal
    bookkeeping.
    """
    in_shape = inputs.shape
    b, c = in_shape[0], in_shape[1]
    spatial = in_shape[2:]
    k, d = codebook.shape
    assert c == d

    x = inputs.astype(jnp.float32)
    cb = codebook.astype(jnp.float32)
    x3 = x.reshape(b, c, -1)                          # NCHW kept; no HBM transpose of x

    if k * d <= 256 and k < 128:
        # Shipped config (D=4, K=16): exact-f32 VPU path with in-kernel gather.
        q3, idx2 = _vq_pallas_small(x3, cb)
        quantized = q3.reshape(in_shape)
    else:
        # General path: MXU distance matmul emits only indices; the exact
        # codebook-row gather happens here (cheap XLA gather).
        idx2 = _vq_pallas_mxu(x3, cb)
        q3 = jnp.moveaxis(jnp.take(cb, idx2, axis=0), -1, 1)   # [B, C, S]
        quantized = q3.reshape(in_shape)

    encoding_indices = idx2.reshape((b,) + spatial)
    idx_flat = idx2.reshape(-1)

    # loss = commitment_cost * mse(quantized.detach(), inputs)
    loss = commitment_cost * jnp.mean((jax.lax.stop_gradient(quantized) - x) ** 2)

    # Straight-through estimator: forward value equals `quantized`.
    quantized_out = x + jax.lax.stop_gradient(quantized - x)

    # Perplexity (VectorQuantizer.forward bookkeeping; torch.histc equivalent).
    counts = jnp.bincount(idx_flat, length=k).astype(jnp.float32)
    avg_probs = counts / idx_flat.size
    perplexity = jnp.exp(-jnp.sum(avg_probs * jnp.log(avg_probs + 1e-10)))

    # TODO(synk): training-time EMA buffer updates (ema_cluster_size, ema_w,
    # embedding refresh) and the DDP all-reduce are stateful side effects that do
    # not affect this call's returned values; not implemented here.
    return loss, quantized_out, encoding_indices, perplexity


if __name__ == "__main__":
    commitment_cost = 0.25
    key = jax.random.PRNGKey(0)
    k_in, k_emb, k_in2, k_emb2 = jax.random.split(key, 4)

    # ---- Path 1: shipped config (embedding_dim=4, num_embeddings=16) -> VPU path.
    embedding_dim, num_embeddings = 4, 16
    B, C, H, W = 2, embedding_dim, 16, 16
    inputs = jax.random.normal(k_in, (B, C, H, W), dtype=jnp.float32)
    codebook = jax.random.normal(k_emb, (num_embeddings, embedding_dim),
                                 dtype=jnp.float32)     # nn.Embedding default N(0,1)

    loss, quantized, encoding_indices, perplexity = vector_quantizer_forward(
        inputs, codebook, commitment_cost)
    jax.block_until_ready((loss, quantized, encoding_indices, perplexity))

    assert quantized.shape == (B, C, H, W)
    assert encoding_indices.shape == (B, H, W)
    assert loss.shape == ()

    flat = jnp.moveaxis(inputs, 1, -1).reshape(-1, C)
    d2 = jnp.sum((flat[:, None, :] - codebook[None, :, :]) ** 2, axis=-1)
    idx_f = encoding_indices.reshape(-1)
    chosen = jnp.take_along_axis(d2, idx_f[:, None], axis=1)[:, 0]
    best = jnp.min(d2, axis=1)
    assert bool(jnp.all(chosen <= best + 1e-4 * (1.0 + best)))
    q_sel = jnp.moveaxis(codebook[idx_f].reshape(B, H, W, C), -1, 1)
    assert bool(jnp.allclose(quantized, q_sel, atol=1e-5))
    ref_loss = commitment_cost * jnp.mean((q_sel - inputs) ** 2)
    assert bool(jnp.allclose(loss, ref_loss, atol=1e-5, rtol=1e-5))
    assert float(perplexity) > 0.0

    # ---- Path 2: larger codebook (D=32, K=512) -> MXU path (idx in kernel,
    #      exact gather in wrapper).
    D2, K2 = 32, 512
    B2, H2, W2 = 2, 16, 16
    inputs2 = jax.random.normal(k_in2, (B2, D2, H2, W2), dtype=jnp.float32)
    codebook2 = jax.random.normal(k_emb2, (K2, D2), dtype=jnp.float32)
    loss2, quantized2, idx2, perp2 = vector_quantizer_forward(
        inputs2, codebook2, commitment_cost)
    jax.block_until_ready((loss2, quantized2, idx2, perp2))

    assert quantized2.shape == inputs2.shape
    assert idx2.shape == (B2, H2, W2)
    flat2 = jnp.moveaxis(inputs2, 1, -1).reshape(-1, D2)
    d2b = jnp.sum((flat2[:, None, :] - codebook2[None, :, :]) ** 2, axis=-1)
    idx2f = idx2.reshape(-1)
    chosen2 = jnp.take_along_axis(d2b, idx2f[:, None], axis=1)[:, 0]
    best2 = jnp.min(d2b, axis=1)
    assert bool(jnp.all(chosen2 <= best2 + 1e-3 * (1.0 + best2)))
    q_sel2 = jnp.moveaxis(codebook2[idx2f].reshape(B2, H2, W2, D2), -1, 1)
    assert bool(jnp.allclose(quantized2, q_sel2, atol=1e-5))
    assert float(perp2) > 0.0

    print("KERNEL_OK")
</pallas_src>

<mosaic_0001>
module attributes {stable_mosaic.version = 11 : i64} {
  func.func @_vq_vpu_kernel(%arg0: i32, %arg1: i32, %arg2: memref<64xf32, #tpu.memory_space<smem>>, %arg3: memref<64xf32, #tpu.memory_space<smem>>, %arg4: memref<16xf32, #tpu.memory_space<smem>>, %arg5: memref<1x4x2x128xf32, #tpu.memory_space<vmem>>, %arg6: memref<1x4x2x128xf32, #tpu.memory_space<vmem>>, %arg7: memref<1x2x128xi32, #tpu.memory_space<vmem>>) attributes {dimension_semantics = [#tpu.dimension_semantics<parallel>, #tpu.dimension_semantics<parallel>], iteration_bounds = array<i64: 2, 1>, scalar_prefetch = 0 : i64, scratch_operands = 0 : i64, tpu.core_type = #tpu.core_type<tc>, window_params = [{transform_indices = @transform_0, window_bounds = array<i64: 64>}, {transform_indices = @transform_1, window_bounds = array<i64: 64>}, {transform_indices = @transform_2, window_bounds = array<i64: 16>}, {transform_indices = @transform_3, window_bounds = array<i64: 1, 4, 2, 128>}, {transform_indices = @transform_4, window_bounds = array<i64: 1, 4, 2, 128>}, {transform_indices = @transform_5, window_bounds = array<i64: 1, 2, 128>}]} {
    %c0 = arith.constant 0 : index
    %c0_0 = arith.constant 0 : index
    %c0_1 = arith.constant 0 : index
    %c0_2 = arith.constant 0 : index
    %0 = vector.load %arg5[%c0, %c0_0, %c0_1, %c0_2] : memref<1x4x2x128xf32, #tpu.memory_space<vmem>>, vector<1x4x2x128xf32>
    %1 = vector.shape_cast %0 : vector<1x4x2x128xf32> to vector<4x2x128xf32>
    %2 = vector.extract_strided_slice %1 {offsets = [0, 0, 0], sizes = [1, 2, 128], strides = [1, 1, 1]} : vector<4x2x128xf32> to vector<1x2x128xf32>
    %3 = vector.shape_cast %2 : vector<1x2x128xf32> to vector<2x128xf32>
    %4 = vector.extract_strided_slice %1 {offsets = [1, 0, 0], sizes = [1, 2, 128], strides = [1, 1, 1]} : vector<4x2x128xf32> to vector<1x2x128xf32>
    %5 = vector.shape_cast %4 : vector<1x2x128xf32> to vector<2x128xf32>
    %6 = vector.extract_strided_slice %1 {offsets = [2, 0, 0], sizes = [1, 2, 128], strides = [1, 1, 1]} : vector<4x2x128xf32> to vector<1x2x128xf32>
    %7 = vector.shape_cast %6 : vector<1x2x128xf32> to vector<2x128xf32>
    %8 = vector.extract_strided_slice %1 {offsets = [3, 0, 0], sizes = [1, 2, 128], strides = [1, 1, 1]} : vector<4x2x128xf32> to vector<1x2x128xf32>
    %9 = vector.shape_cast %8 : vector<1x2x128xf32> to vector<2x128xf32>
    %c0_3 = arith.constant 0 : index
    %10 = memref.load %arg3[%c0_3] : memref<64xf32, #tpu.memory_space<smem>>
    %11 = vector.broadcast %10 : f32 to vector<2x128xf32>
    %12 = arith.mulf %11, %3 : vector<2x128xf32>
    %c1 = arith.constant 1 : index
    %13 = memref.load %arg3[%c1] : memref<64xf32, #tpu.memory_space<smem>>
    %14 = vector.broadcast %13 : f32 to vector<2x128xf32>
    %15 = arith.mulf %14, %5 : vector<2x128xf32>
    %16 = arith.addf %12, %15 : vector<2x128xf32>
    %c2 = arith.constant 2 : index
    %17 = memref.load %arg3[%c2] : memref<64xf32, #tpu.memory_space<smem>>
    %18 = vector.broadcast %17 : f32 to vector<2x128xf32>
    %19 = arith.mulf %18, %7 : vector<2x128xf32>
    %20 = arith.addf %16, %19 : vector<2x128xf32>
    %c3 = arith.constant 3 : index
    %21 = memref.load %arg3[%c3] : memref<64xf32, #tpu.memory_space<smem>>
    %22 = vector.broadcast %21 : f32 to vector<2x128xf32>
    %23 = arith.mulf %22, %9 : vector<2x128xf32>
    %24 = arith.addf %20, %23 : vector<2x128xf32>
    %c0_4 = arith.constant 0 : index
    %25 = memref.load %arg4[%c0_4] : memref<16xf32, #tpu.memory_space<smem>>
    %26 = vector.broadcast %25 : f32 to vector<2x128xf32>
    %27 = arith.addf %24, %26 : vector<2x128xf32>
    %c0_i32 = arith.constant 0 : i32
    %28 = vector.broadcast %c0_i32 : i32 to vector<2x128xi32>
    %cst = arith.constant 0.000000e+00 : f32
    %29 = vector.broadcast %cst : f32 to vector<2x128xf32>
    %c0_5 = arith.constant 0 : index
    %30 = memref.load %arg2[%c0_5] : memref<64xf32, #tpu.memory_space<smem>>
    %31 = vector.broadcast %30 : f32 to vector<2x128xf32>
    %32 = arith.addf %29, %31 : vector<2x128xf32>
    %cst_6 = arith.constant 0.000000e+00 : f32
    %33 = vector.broadcast %cst_6 : f32 to vector<2x128xf32>
    %c1_7 = arith.constant 1 : index
    %34 = memref.load %arg2[%c1_7] : memref<64xf32, #tpu.memory_space<smem>>
    %35 = vector.broadcast %34 : f32 to vector<2x128xf32>
    %36 = arith.addf %33, %35 : vector<2x128xf32>
    %cst_8 = arith.constant 0.000000e+00 : f32
    %37 = vector.broadcast %cst_8 : f32 to vector<2x128xf32>
    %c2_9 = arith.constant 2 : index
    %38 = memref.load %arg2[%c2_9] : memref<64xf32, #tpu.memory_space<smem>>
    %39 = vector.broadcast %38 : f32 to vector<2x128xf32>
    %40 = arith.addf %37, %39 : vector<2x128xf32>
    %cst_10 = arith.constant 0.000000e+00 : f32
    %41 = vector.broadcast %cst_10 : f32 to vector<2x128xf32>
    %c3_11 = arith.constant 3 : index
    %42 = memref.load %arg2[%c3_11] : memref<64xf32, #tpu.memory_space<smem>>
    %43 = vector.broadcast %42 : f32 to vector<2x128xf32>
    %44 = arith.addf %41, %43 : vector<2x128xf32>
    %c4 = arith.constant 4 : index
    %45 = memref.load %arg3[%c4] : memref<64xf32, #tpu.memory_space<smem>>
    %46 = vector.broadcast %45 : f32 to vector<2x128xf32>
    %47 = arith.mulf %46, %3 : vector<2x128xf32>
    %c5 = arith.constant 5 : index
    %48 = memref.load %arg3[%c5] : memref<64xf32, #tpu.memory_space<smem>>
    %49 = vector.broadcast %48 : f32 to vector<2x128xf32>
    %50 = arith.mulf %49, %5 : vector<2x128xf32>
    %51 = arith.addf %47, %50 : vector<2x128xf32>
    %c6 = arith.constant 6 : index
    %52 = memref.load %arg3[%c6] : memref<64xf32, #tpu.memory_space<smem>>
    %53 = vector.broadcast %52 : f32 to vector<2x128xf32>
    %54 = arith.mulf %53, %7 : vector<2x128xf32>
    %55 = arith.addf %51, %54 : vector<2x128xf32>
    %c7 = arith.constant 7 : index
    %56 = memref.load %arg3[%c7] : memref<64xf32, #tpu.memory_space<smem>>
    %57 = vector.broadcast %56 : f32 to vector<2x128xf32>
    %58 = arith.mulf %57, %9 : vector<2x128xf32>
    %59 = arith.addf %55, %58 : vector<2x128xf32>
    %c1_12 = arith.constant 1 : index
    %60 = memref.load %arg4[%c1_12] : memref<16xf32, #tpu.memory_space<smem>>
    %61 = vector.broadcast %60 : f32 to vector<2x128xf32>
    %62 = arith.addf %59, %61 : vector<2x128xf32>
    %63 = arith.cmpf olt, %62, %27 : vector<2x128xf32>
    %64 = arith.select %63, %62, %27 : vector<2x128xi1>, vector<2x128xf32>
    %c1_i32 = arith.constant 1 : i32
    %65 = vector.broadcast %c1_i32 : i32 to vector<2x128xi32>
    %66 = arith.select %63, %65, %28 : vector<2x128xi1>, vector<2x128xi32>
    %c4_13 = arith.constant 4 : index
    %67 = memref.load %arg2[%c4_13] : memref<64xf32, #tpu.memory_space<smem>>
    %68 = vector.broadcast %67 : f32 to vector<2x128xf32>
    %69 = arith.select %63, %68, %32 : vector<2x128xi1>, vector<2x128xf32>
    %c5_14 = arith.constant 5 : index
    %70 = memref.load %arg2[%c5_14] : memref<64xf32, #tpu.memory_space<smem>>
    %71 = vector.broadcast %70 : f32 to vector<2x128xf32>
    %72 = arith.select %63, %71, %36 : vector<2x128xi1>, vector<2x128xf32>
    %c6_15 = arith.constant 6 : index
    %73 = memref.load %arg2[%c6_15] : memref<64xf32, #tpu.memory_space<smem>>
    %74 = vector.broadcast %73 : f32 to vector<2x128xf32>
    %75 = arith.select %63, %74, %40 : vector<2x128xi1>, vector<2x128xf32>
    %c7_16 = arith.constant 7 : index
    %76 = memref.load %arg2[%c7_16] : memref<64xf32, #tpu.memory_space<smem>>
    %77 = vector.broadcast %76 : f32 to vector<2x128xf32>
    %78 = arith.select %63, %77, %44 : vector<2x128xi1>, vector<2x128xf32>
    %c8 = arith.constant 8 : index
    %79 = memref.load %arg3[%c8] : memref<64xf32, #tpu.memory_space<smem>>
    %80 = vector.broadcast %79 : f32 to vector<2x128xf32>
    %81 = arith.mulf %80, %3 : vector<2x128xf32>
    %c9 = arith.constant 9 : index
    %82 = memref.load %arg3[%c9] : memref<64xf32, #tpu.memory_space<smem>>
    %83 = vector.broadcast %82 : f32 to vector<2x128xf32>
    %84 = arith.mulf %83, %5 : vector<2x128xf32>
    %85 = arith.addf %81, %84 : vector<2x128xf32>
    %c10 = arith.constant 10 : index
    %86 = memref.load %arg3[%c10] : memref<64xf32, #tpu.memory_space<smem>>
    %87 = vector.broadcast %86 : f32 to vector<2x128xf32>
    %88 = arith.mulf %87, %7 : vector<2x128xf32>
    %89 = arith.addf %85, %88 : vector<2x128xf32>
    %c11 = arith.constant 11 : index
    %90 = memref.load %arg3[%c11] : memref<64xf32, #tpu.memory_space<smem>>
    %91 = vector.broadcast %90 : f32 to vector<2x128xf32>
    %92 = arith.mulf %91, %9 : vector<2x128xf32>
    %93 = arith.addf %89, %92 : vector<2x128xf32>
    %c2_17 = arith.constant 2 : index
    %94 = memref.load %arg4[%c2_17] : memref<16xf32, #tpu.memory_space<smem>>
    %95 = vector.broadcast %94 : f32 to vector<2x128xf32>
    %96 = arith.addf %93, %95 : vector<2x128xf32>
    %97 = arith.cmpf olt, %96, %64 : vector<2x128xf32>
    %98 = arith.select %97, %96, %64 : vector<2x128xi1>, vector<2x128xf32>
    %c2_i32 = arith.constant 2 : i32
    %99 = vector.broadcast %c2_i32 : i32 to vector<2x128xi32>
    %100 = arith.select %97, %99, %66 : vector<2x128xi1>, vector<2x128xi32>
    %c8_18 = arith.constant 8 : index
    %101 = memref.load %arg2[%c8_18] : memref<64xf32, #tpu.memory_space<smem>>
    %102 = vector.broadcast %101 : f32 to vector<2x128xf32>
    %103 = arith.select %97, %102, %69 : vector<2x128xi1>, vector<2x128xf32>
    %c9_19 = arith.constant 9 : index
    %104 = memref.load %arg2[%c9_19] : memref<64xf32, #tpu.memory_space<smem>>
    %105 = vector.broadcast %104 : f32 to vector<2x128xf32>
    %106 = arith.select %97, %105, %72 : vector<2x128xi1>, vector<2x128xf32>
    %c10_20 = arith.constant 10 : index
    %107 = memref.load %arg2[%c10_20] : memref<64xf32, #tpu.memory_space<smem>>
    %108 = vector.broadcast %107 : f32 to vector<2x128xf32>
    %109 = arith.select %97, %108, %75 : vector<2x128xi1>, vector<2x128xf32>
    %c11_21 = arith.constant 11 : index
    %110 = memref.load %arg2[%c11_21] : memref<64xf32, #tpu.memory_space<smem>>
    %111 = vector.broadcast %110 : f32 to vector<2x128xf32>
    %112 = arith.select %97, %111, %78 : vector<2x128xi1>, vector<2x128xf32>
    %c12 = arith.constant 12 : index
    %113 = memref.load %arg3[%c12] : memref<64xf32, #tpu.memory_space<smem>>
    %114 = vector.broadcast %113 : f32 to vector<2x128xf32>
    %115 = arith.mulf %114, %3 : vector<2x128xf32>
    %c13 = arith.constant 13 : index
    %116 = memref.load %arg3[%c13] : memref<64xf32, #tpu.memory_space<smem>>
    %117 = vector.broadcast %116 : f32 to vector<2x128xf32>
    %118 = arith.mulf %117, %5 : vector<2x128xf32>
    %119 = arith.addf %115, %118 : vector<2x128xf32>
    %c14 = arith.constant 14 : index
    %120 = memref.load %arg3[%c14] : memref<64xf32, #tpu.memory_space<smem>>
    %121 = vector.broadcast %120 : f32 to vector<2x128xf32>
    %122 = arith.mulf %121, %7 : vector<2x128xf32>
    %123 = arith.addf %119, %122 : vector<2x128xf32>
    %c15 = arith.constant 15 : index
    %124 = memref.load %arg3[%c15] : memref<64xf32, #tpu.memory_space<smem>>
    %125 = vector.broadcast %124 : f32 to vector<2x128xf32>
    %126 = arith.mulf %125, %9 : vector<2x128xf32>
    %127 = arith.addf %123, %126 : vector<2x128xf32>
    %c3_22 = arith.constant 3 : index
    %128 = memref.load %arg4[%c3_22] : memref<16xf32, #tpu.memory_space<smem>>
    %129 = vector.broadcast %128 : f32 to vector<2x128xf32>
    %130 = arith.addf %127, %129 : vector<2x128xf32>
    %131 = arith.cmpf olt, %130, %98 : vector<2x128xf32>
    %132 = arith.select %131, %130, %98 : vector<2x128xi1>, vector<2x128xf32>
    %c3_i32 = arith.constant 3 : i32
    %133 = vector.broadcast %c3_i32 : i32 to vector<2x128xi32>
    %134 = arith.select %131, %133, %100 : vector<2x128xi1>, vector<2x128xi32>
    %c12_23 = arith.constant 12 : index
    %135 = memref.load %arg2[%c12_23] : memref<64xf32, #tpu.memory_space<smem>>
    %136 = vector.broadcast %135 : f32 to vector<2x128xf32>
    %137 = arith.select %131, %136, %103 : vector<2x128xi1>, vector<2x128xf32>
    %c13_24 = arith.constant 13 : index
    %138 = memref.load %arg2[%c13_24] : memref<64xf32, #tpu.memory_space<smem>>
    %139 = vector.broadcast %138 : f32 to vector<2x128xf32>
    %140 = arith.select %131, %139, %106 : vector<2x128xi1>, vector<2x128xf32>
    %c14_25 = arith.constant 14 : index
    %141 = memref.load %arg2[%c14_25] : memref<64xf32, #tpu.memory_space<smem>>
    %142 = vector.broadcast %141 : f32 to vector<2x128xf32>
    %143 = arith.select %131, %142, %109 : vector<2x128xi1>, vector<2x128xf32>
    %c15_26 = arith.constant 15 : index
    %144 = memref.load %arg2[%c15_26] : memref<64xf32, #tpu.memory_space<smem>>
    %145 = vector.broadcast %144 : f32 to vector<2x128xf32>
    %146 = arith.select %131, %145, %112 : vector<2x128xi1>, vector<2x128xf32>
    %c16 = arith.constant 16 : index
    %147 = memref.load %arg3[%c16] : memref<64xf32, #tpu.memory_space<smem>>
    %148 = vector.broadcast %147 : f32 to vector<2x128xf32>
    %149 = arith.mulf %148, %3 : vector<2x128xf32>
    %c17 = arith.constant 17 : index
    %150 = memref.load %arg3[%c17] : memref<64xf32, #tpu.memory_space<smem>>
    %151 = vector.broadcast %150 : f32 to vector<2x128xf32>
    %152 = arith.mulf %151, %5 : vector<2x128xf32>
    %153 = arith.addf %149, %152 : vector<2x128xf32>
    %c18 = arith.constant 18 : index
    %154 = memref.load %arg3[%c18] : memref<64xf32, #tpu.memory_space<smem>>
    %155 = vector.broadcast %154 : f32 to vector<2x128xf32>
    %156 = arith.mulf %155, %7 : vector<2x128xf32>
    %157 = arith.addf %153, %156 : vector<2x128xf32>
    %c19 = arith.constant 19 : index
    %158 = memref.load %arg3[%c19] : memref<64xf32, #tpu.memory_space<smem>>
    %159 = vector.broadcast %158 : f32 to vector<2x128xf32>
    %160 = arith.mulf %159, %9 : vector<2x128xf32>
    %161 = arith.addf %157, %160 : vector<2x128xf32>
    %c4_27 = arith.constant 4 : index
    %162 = memref.load %arg4[%c4_27] : memref<16xf32, #tpu.memory_space<smem>>
    %163 = vector.broadcast %162 : f32 to vector<2x128xf32>
    %164 = arith.addf %161, %163 : vector<2x128xf32>
    %165 = arith.cmpf olt, %164, %132 : vector<2x128xf32>
    %166 = arith.select %165, %164, %132 : vector<2x128xi1>, vector<2x128xf32>
    %c4_i32 = arith.constant 4 : i32
    %167 = vector.broadcast %c4_i32 : i32 to vector<2x128xi32>
    %168 = arith.select %165, %167, %134 : vector<2x128xi1>, vector<2x128xi32>
    %c16_28 = arith.constant 16 : index
    %169 = memref.load %arg2[%c16_28] : memref<64xf32, #tpu.memory_space<smem>>
    %170 = vector.broadcast %169 : f32 to vector<2x128xf32>
    %171 = arith.select %165, %170, %137 : vector<2x128xi1>, vector<2x128xf32>
    %c17_29 = arith.constant 17 : index
    %172 = memref.load %arg2[%c17_29] : memref<64xf32, #tpu.memory_space<smem>>
    %173 = vector.broadcast %172 : f32 to vector<2x128xf32>
    %174 = arith.select %165, %173, %140 : vector<2x128xi1>, vector<2x128xf32>
    %c18_30 = arith.constant 18 : index
    %175 = memref.load %arg2[%c18_30] : memref<64xf32, #tpu.memory_space<smem>>
    %176 = vector.broadcast %175 : f32 to vector<2x128xf32>
    %177 = arith.select %165, %176, %143 : vector<2x128xi1>, vector<2x128xf32>
    %c19_31 = arith.constant 19 : index
    %178 = memref.load %arg2[%c19_31] : memref<64xf32, #tpu.memory_space<smem>>
    %179 = vector.broadcast %178 : f32 to vector<2x128xf32>
    %180 = arith.select %165, %179, %146 : vector<2x128xi1>, vector<2x128xf32>
    %c20 = arith.constant 20 : index
    %181 = memref.load %arg3[%c20] : memref<64xf32, #tpu.memory_space<smem>>
    %182 = vector.broadcast %181 : f32 to vector<2x128xf32>
    %183 = arith.mulf %182, %3 : vector<2x128xf32>
    %c21 = arith.constant 21 : index
    %184 = memref.load %arg3[%c21] : memref<64xf32, #tpu.memory_space<smem>>
    %185 = vector.broadcast %184 : f32 to vector<2x128xf32>
    %186 = arith.mulf %185, %5 : vector<2x128xf32>
    %187 = arith.addf %183, %186 : vector<2x128xf32>
    %c22 = arith.constant 22 : index
    %188 = memref.load %arg3[%c22] : memref<64xf32, #tpu.memory_space<smem>>
    %189 = vector.broadcast %188 : f32 to vector<2x128xf32>
    %190 = arith.mulf %189, %7 : vector<2x128xf32>
    %191 = arith.addf %187, %190 : vector<2x128xf32>
    %c23 = arith.constant 23 : index
    %192 = memref.load %arg3[%c23] : memref<64xf32, #tpu.memory_space<smem>>
    %193 = vector.broadcast %192 : f32 to vector<2x128xf32>
    %194 = arith.mulf %193, %9 : vector<2x128xf32>
    %195 = arith.addf %191, %194 : vector<2x128xf32>
    %c5_32 = arith.constant 5 : index
    %196 = memref.load %arg4[%c5_32] : memref<16xf32, #tpu.memory_space<smem>>
    %197 = vector.broadcast %196 : f32 to vector<2x128xf32>
    %198 = arith.addf %195, %197 : vector<2x128xf32>
    %199 = arith.cmpf olt, %198, %166 : vector<2x128xf32>
    %200 = arith.select %199, %198, %166 : vector<2x128xi1>, vector<2x128xf32>
    %c5_i32 = arith.constant 5 : i32
    %201 = vector.broadcast %c5_i32 : i32 to vector<2x128xi32>
    %202 = arith.select %199, %201, %168 : vector<2x128xi1>, vector<2x128xi32>
    %c20_33 = arith.constant 20 : index
    %203 = memref.load %arg2[%c20_33] : memref<64xf32, #tpu.memory_space<smem>>
    %204 = vector.broadcast %203 : f32 to vector<2x128xf32>
    %205 = arith.select %199, %204, %171 : vector<2x128xi1>, vector<2x128xf32>
    %c21_34 = arith.constant 21 : index
    %206 = memref.load %arg2[%c21_34] : memref<64xf32, #tpu.memory_space<smem>>
    %207 = vector.broadcast %206 : f32 to vector<2x128xf32>
    %208 = arith.select %199, %207, %174 : vector<2x128xi1>, vector<2x128xf32>
    %c22_35 = arith.constant 22 : index
    %209 = memref.load %arg2[%c22_35] : memref<64xf32, #tpu.memory_space<smem>>
    %210 = vector.broadcast %209 : f32 to vector<2x128xf32>
    %211 = arith.select %199, %210, %177 : vector<2x128xi1>, vector<2x128xf32>
    %c23_36 = arith.constant 23 : index
    %212 = memref.load %arg2[%c23_36] : memref<64xf32, #tpu.memory_space<smem>>
    %213 = vector.broadcast %212 : f32 to vector<2x128xf32>
    %214 = arith.select %199, %213, %180 : vector<2x128xi1>, vector<2x128xf32>
    %c24 = arith.constant 24 : index
    %215 = memref.load %arg3[%c24] : memref<64xf32, #tpu.memory_space<smem>>
    %216 = vector.broadcast %215 : f32 to vector<2x128xf32>
    %217 = arith.mulf %216, %3 : vector<2x128xf32>
    %c25 = arith.constant 25 : index
    %218 = memref.load %arg3[%c25] : memref<64xf32, #tpu.memory_space<smem>>
    %219 = vector.broadcast %218 : f32 to vector<2x128xf32>
    %220 = arith.mulf %219, %5 : vector<2x128xf32>
    %221 = arith.addf %217, %220 : vector<2x128xf32>
    %c26 = arith.constant 26 : index
    %222 = memref.load %arg3[%c26] : memref<64xf32, #tpu.memory_space<smem>>
    %223 = vector.broadcast %222 : f32 to vector<2x128xf32>
    %224 = arith.mulf %223, %7 : vector<2x128xf32>
    %225 = arith.addf %221, %224 : vector<2x128xf32>
    %c27 = arith.constant 27 : index
    %226 = memref.load %arg3[%c27] : memref<64xf32, #tpu.memory_space<smem>>
    %227 = vector.broadcast %226 : f32 to vector<2x128xf32>
    %228 = arith.mulf %227, %9 : vector<2x128xf32>
    %229 = arith.addf %225, %228 : vector<2x128xf32>
    %c6_37 = arith.constant 6 : index
    %230 = memref.load %arg4[%c6_37] : memref<16xf32, #tpu.memory_space<smem>>
    %231 = vector.broadcast %230 : f32 to vector<2x128xf32>
    %232 = arith.addf %229, %231 : vector<2x128xf32>
    %233 = arith.cmpf olt, %232, %200 : vector<2x128xf32>
    %234 = arith.select %233, %232, %200 : vector<2x128xi1>, vector<2x128xf32>
    %c6_i32 = arith.constant 6 : i32
    %235 = vector.broadcast %c6_i32 : i32 to vector<2x128xi32>
    %236 = arith.select %233, %235, %202 : vector<2x128xi1>, vector<2x128xi32>
    %c24_38 = arith.constant 24 : index
    %237 = memref.load %arg2[%c24_38] : memref<64xf32, #tpu.memory_space<smem>>
    %238 = vector.broadcast %237 : f32 to vector<2x128xf32>
    %239 = arith.select %233, %238, %205 : vector<2x128xi1>, vector<2x128xf32>
    %c25_39 = arith.constant 25 : index
    %240 = memref.load %arg2[%c25_39] : memref<64xf32, #tpu.memory_space<smem>>
    %241 = vector.broadcast %240 : f32 to vector<2x128xf32>
    %242 = arith.select %233, %241, %208 : vector<2x128xi1>, vector<2x128xf32>
    %c26_40 = arith.constant 26 : index
    %243 = memref.load %arg2[%c26_40] : memref<64xf32, #tpu.memory_space<smem>>
    %244 = vector.broadcast %243 : f32 to vector<2x128xf32>
    %245 = arith.select %233, %244, %211 : vector<2x128xi1>, vector<2x128xf32>
    %c27_41 = arith.constant 27 : index
    %246 = memref.load %arg2[%c27_41] : memref<64xf32, #tpu.memory_space<smem>>
    %247 = vector.broadcast %246 : f32 to vector<2x128xf32>
    %248 = arith.select %233, %247, %214 : vector<2x128xi1>, vector<2x128xf32>
    %c28 = arith.constant 28 : index
    %249 = memref.load %arg3[%c28] : memref<64xf32, #tpu.memory_space<smem>>
    %250 = vector.broadcast %249 : f32 to vector<2x128xf32>
    %251 = arith.mulf %250, %3 : vector<2x128xf32>
    %c29 = arith.constant 29 : index
    %252 = memref.load %arg3[%c29] : memref<64xf32, #tpu.memory_space<smem>>
    %253 = vector.broadcast %252 : f32 to vector<2x128xf32>
    %254 = arith.mulf %253, %5 : vector<2x128xf32>
    %255 = arith.addf %251, %254 : vector<2x128xf32>
    %c30 = arith.constant 30 : index
    %256 = memref.load %arg3[%c30] : memref<64xf32, #tpu.memory_space<smem>>
    %257 = vector.broadcast %256 : f32 to vector<2x128xf32>
    %258 = arith.mulf %257, %7 : vector<2x128xf32>
    %259 = arith.addf %255, %258 : vector<2x128xf32>
    %c31 = arith.constant 31 : index
    %260 = memref.load %arg3[%c31] : memref<64xf32, #tpu.memory_space<smem>>
    %261 = vector.broadcast %260 : f32 to vector<2x128xf32>
    %262 = arith.mulf %261, %9 : vector<2x128xf32>
    %263 = arith.addf %259, %262 : vector<2x128xf32>
    %c7_42 = arith.constant 7 : index
    %264 = memref.load %arg4[%c7_42] : memref<16xf32, #tpu.memory_space<smem>>
    %265 = vector.broadcast %264 : f32 to vector<2x128xf32>
    %266 = arith.addf %263, %265 : vector<2x128xf32>
    %267 = arith.cmpf olt, %266, %234 : vector<2x128xf32>
    %268 = arith.select %267, %266, %234 : vector<2x128xi1>, vector<2x128xf32>
    %c7_i32 = arith.constant 7 : i32
    %269 = vector.broadcast %c7_i32 : i32 to vector<2x128xi32>
    %270 = arith.select %267, %269, %236 : vector<2x128xi1>, vector<2x128xi32>
    %c28_43 = arith.constant 28 : index
    %271 = memref.load %arg2[%c28_43] : memref<64xf32, #tpu.memory_space<smem>>
    %272 = vector.broadcast %271 : f32 to vector<2x128xf32>
    %273 = arith.select %267, %272, %239 : vector<2x128xi1>, vector<2x128xf32>
    %c29_44 = arith.constant 29 : index
    %274 = memref.load %arg2[%c29_44] : memref<64xf32, #tpu.memory_space<smem>>
    %275 = vector.broadcast %274 : f32 to vector<2x128xf32>
    %276 = arith.select %267, %275, %242 : vector<2x128xi1>, vector<2x128xf32>
    %c30_45 = arith.constant 30 : index
    %277 = memref.load %arg2[%c30_45] : memref<64xf32, #tpu.memory_space<smem>>
    %278 = vector.broadcast %277 : f32 to vector<2x128xf32>
    %279 = arith.select %267, %278, %245 : vector<2x128xi1>, vector<2x128xf32>
    %c31_46 = arith.constant 31 : index
    %280 = memref.load %arg2[%c31_46] : memref<64xf32, #tpu.memory_space<smem>>
    %281 = vector.broadcast %280 : f32 to vector<2x128xf32>
    %282 = arith.select %267, %281, %248 : vector<2x128xi1>, vector<2x128xf32>
    %c32 = arith.constant 32 : index
    %283 = memref.load %arg3[%c32] : memref<64xf32, #tpu.memory_space<smem>>
    %284 = vector.broadcast %283 : f32 to vector<2x128xf32>
    %285 = arith.mulf %284, %3 : vector<2x128xf32>
    %c33 = arith.constant 33 : index
    %286 = memref.load %arg3[%c33] : memref<64xf32, #tpu.memory_space<smem>>
    %287 = vector.broadcast %286 : f32 to vector<2x128xf32>
    %288 = arith.mulf %287, %5 : vector<2x128xf32>
    %289 = arith.addf %285, %288 : vector<2x128xf32>
    %c34 = arith.constant 34 : index
    %290 = memref.load %arg3[%c34] : memref<64xf32, #tpu.memory_space<smem>>
    %291 = vector.broadcast %290 : f32 to vector<2x128xf32>
    %292 = arith.mulf %291, %7 : vector<2x128xf32>
    %293 = arith.addf %289, %292 : vector<2x128xf32>
    %c35 = arith.constant 35 : index
    %294 = memref.load %arg3[%c35] : memref<64xf32, #tpu.memory_space<smem>>
    %295 = vector.broadcast %294 : f32 to vector<2x128xf32>
    %296 = arith.mulf %295, %9 : vector<2x128xf32>
    %297 = arith.addf %293, %296 : vector<2x128xf32>
    %c8_47 = arith.constant 8 : index
    %298 = memref.load %arg4[%c8_47] : memref<16xf32, #tpu.memory_space<smem>>
    %299 = vector.broadcast %298 : f32 to vector<2x128xf32>
    %300 = arith.addf %297, %299 : vector<2x128xf32>
    %301 = arith.cmpf olt, %300, %268 : vector<2x128xf32>
    %302 = arith.select %301, %300, %268 : vector<2x128xi1>, vector<2x128xf32>
    %c8_i32 = arith.constant 8 : i32
    %303 = vector.broadcast %c8_i32 : i32 to vector<2x128xi32>
    %304 = arith.select %301, %303, %270 : vector<2x128xi1>, vector<2x128xi32>
    %c32_48 = arith.constant 32 : index
    %305 = memref.load %arg2[%c32_48] : memref<64xf32, #tpu.memory_space<smem>>
    %306 = vector.broadcast %305 : f32 to vector<2x128xf32>
    %307 = arith.select %301, %306, %273 : vector<2x128xi1>, vector<2x128xf32>
    %c33_49 = arith.constant 33 : index
    %308 = memref.load %arg2[%c33_49] : memref<64xf32, #tpu.memory_space<smem>>
    %309 = vector.broadcast %308 : f32 to vector<2x128xf32>
    %310 = arith.select %301, %309, %276 : vector<2x128xi1>, vector<2x128xf32>
    %c34_50 = arith.constant 34 : index
    %311 = memref.load %arg2[%c34_50] : memref<64xf32, #tpu.memory_space<smem>>
    %312 = vector.broadcast %311 : f32 to vector<2x128xf32>
    %313 = arith.select %301, %312, %279 : vector<2x128xi1>, vector<2x128xf32>
    %c35_51 = arith.constant 35 : index
    %314 = memref.load %arg2[%c35_51] : memref<64xf32, #tpu.memory_space<smem>>
    %315 = vector.broadcast %314 : f32 to vector<2x128xf32>
    %316 = arith.select %301, %315, %282 : vector<2x128xi1>, vector<2x128xf32>
    %c36 = arith.constant 36 : index
    %317 = memref.load %arg3[%c36] : memref<64xf32, #tpu.memory_space<smem>>
    %318 = vector.broadcast %317 : f32 to vector<2x128xf32>
    %319 = arith.mulf %318, %3 : vector<2x128xf32>
    %c37 = arith.constant 37 : index
    %320 = memref.load %arg3[%c37] : memref<64xf32, #tpu.memory_space<smem>>
    %321 = vector.broadcast %320 : f32 to vector<2x128xf32>
    %322 = arith.mulf %321, %5 : vector<2x128xf32>
    %323 = arith.addf %319, %322 : vector<2x128xf32>
    %c38 = arith.constant 38 : index
    %324 = memref.load %arg3[%c38] : memref<64xf32, #tpu.memory_space<smem>>
    %325 = vector.broadcast %324 : f32 to vector<2x128xf32>
    %326 = arith.mulf %325, %7 : vector<2x128xf32>
    %327 = arith.addf %323, %326 : vector<2x128xf32>
    %c39 = arith.constant 39 : index
    %328 = memref.load %arg3[%c39] : memref<64xf32, #tpu.memory_space<smem>>
    %329 = vector.broadcast %328 : f32 to vector<2x128xf32>
    %330 = arith.mulf %329, %9 : vector<2x128xf32>
    %331 = arith.addf %327, %330 : vector<2x128xf32>
    %c9_52 = arith.constant 9 : index
    %332 = memref.load %arg4[%c9_52] : memref<16xf32, #tpu.memory_space<smem>>
    %333 = vector.broadcast %332 : f32 to vector<2x128xf32>
    %334 = arith.addf %331, %333 : vector<2x128xf32>
    %335 = arith.cmpf olt, %334, %302 : vector<2x128xf32>
    %336 = arith.select %335, %334, %302 : vector<2x128xi1>, vector<2x128xf32>
    %c9_i32 = arith.constant 9 : i32
    %337 = vector.broadcast %c9_i32 : i32 to vector<2x128xi32>
    %338 = arith.select %335, %337, %304 : vector<2x128xi1>, vector<2x128xi32>
    %c36_53 = arith.constant 36 : index
    %339 = memref.load %arg2[%c36_53] : memref<64xf32, #tpu.memory_space<smem>>
    %340 = vector.broadcast %339 : f32 to vector<2x128xf32>
    %341 = arith.select %335, %340, %307 : vector<2x128xi1>, vector<2x128xf32>
    %c37_54 = arith.constant 37 : index
    %342 = memref.load %arg2[%c37_54] : memref<64xf32, #tpu.memory_space<smem>>
    %343 = vector.broadcast %342 : f32 to vector<2x128xf32>
    %344 = arith.select %335, %343, %310 : vector<2x128xi1>, vector<2x128xf32>
    %c38_55 = arith.constant 38 : index
    %345 = memref.load %arg2[%c38_55] : memref<64xf32, #tpu.memory_space<smem>>
    %346 = vector.broadcast %345 : f32 to vector<2x128xf32>
    %347 = arith.select %335, %346, %313 : vector<2x128xi1>, vector<2x128xf32>
    %c39_56 = arith.constant 39 : index
    %348 = memref.load %arg2[%c39_56] : memref<64xf32, #tpu.memory_space<smem>>
    %349 = vector.broadcast %348 : f32 to vector<2x128xf32>
    %350 = arith.select %335, %349, %316 : vector<2x128xi1>, vector<2x128xf32>
    %c40 = arith.constant 40 : index
    %351 = memref.load %arg3[%c40] : memref<64xf32, #tpu.memory_space<smem>>
    %352 = vector.broadcast %351 : f32 to vector<2x128xf32>
    %353 = arith.mulf %352, %3 : vector<2x128xf32>
    %c41 = arith.constant 41 : index
    %354 = memref.load %arg3[%c41] : memref<64xf32, #tpu.memory_space<smem>>
    %355 = vector.broadcast %354 : f32 to vector<2x128xf32>
    %356 = arith.mulf %355, %5 : vector<2x128xf32>
    %357 = arith.addf %353, %356 : vector<2x128xf32>
    %c42 = arith.constant 42 : index
    %358 = memref.load %arg3[%c42] : memref<64xf32, #tpu.memory_space<smem>>
    %359 = vector.broadcast %358 : f32 to vector<2x128xf32>
    %360 = arith.mulf %359, %7 : vector<2x128xf32>
    %361 = arith.addf %357, %360 : vector<2x128xf32>
    %c43 = arith.constant 43 : index
    %362 = memref.load %arg3[%c43] : memref<64xf32, #tpu.memory_space<smem>>
    %363 = vector.broadcast %362 : f32 to vector<2x128xf32>
    %364 = arith.mulf %363, %9 : vector<2x128xf32>
    %365 = arith.addf %361, %364 : vector<2x128xf32>
    %c10_57 = arith.constant 10 : index
    %366 = memref.load %arg4[%c10_57] : memref<16xf32, #tpu.memory_space<smem>>
    %367 = vector.broadcast %366 : f32 to vector<2x128xf32>
    %368 = arith.addf %365, %367 : vector<2x128xf32>
    %369 = arith.cmpf olt, %368, %336 : vector<2x128xf32>
    %370 = arith.select %369, %368, %336 : vector<2x128xi1>, vector<2x128xf32>
    %c10_i32 = arith.constant 10 : i32
    %371 = vector.broadcast %c10_i32 : i32 to vector<2x128xi32>
    %372 = arith.select %369, %371, %338 : vector<2x128xi1>, vector<2x128xi32>
    %c40_58 = arith.constant 40 : index
    %373 = memref.load %arg2[%c40_58] : memref<64xf32, #tpu.memory_space<smem>>
    %374 = vector.broadcast %373 : f32 to vector<2x128xf32>
    %375 = arith.select %369, %374, %341 : vector<2x128xi1>, vector<2x128xf32>
    %c41_59 = arith.constant 41 : index
    %376 = memref.load %arg2[%c41_59] : memref<64xf32, #tpu.memory_space<smem>>
    %377 = vector.broadcast %376 : f32 to vector<2x128xf32>
    %378 = arith.select %369, %377, %344 : vector<2x128xi1>, vector<2x128xf32>
    %c42_60 = arith.constant 42 : index
    %379 = memref.load %arg2[%c42_60] : memref<64xf32, #tpu.memory_space<smem>>
    %380 = vector.broadcast %379 : f32 to vector<2x128xf32>
    %381 = arith.select %369, %380, %347 : vector<2x128xi1>, vector<2x128xf32>
    %c43_61 = arith.constant 43 : index
    %382 = memref.load %arg2[%c43_61] : memref<64xf32, #tpu.memory_space<smem>>
    %383 = vector.broadcast %382 : f32 to vector<2x128xf32>
    %384 = arith.select %369, %383, %350 : vector<2x128xi1>, vector<2x128xf32>
    %c44 = arith.constant 44 : index
    %385 = memref.load %arg3[%c44] : memref<64xf32, #tpu.memory_space<smem>>
    %386 = vector.broadcast %385 : f32 to vector<2x128xf32>
    %387 = arith.mulf %386, %3 : vector<2x128xf32>
    %c45 = arith.constant 45 : index
    %388 = memref.load %arg3[%c45] : memref<64xf32, #tpu.memory_space<smem>>
    %389 = vector.broadcast %388 : f32 to vector<2x128xf32>
    %390 = arith.mulf %389, %5 : vector<2x128xf32>
    %391 = arith.addf %387, %390 : vector<2x128xf32>
    %c46 = arith.constant 46 : index
    %392 = memref.load %arg3[%c46] : memref<64xf32, #tpu.memory_space<smem>>
    %393 = vector.broadcast %392 : f32 to vector<2x128xf32>
    %394 = arith.mulf %393, %7 : vector<2x128xf32>
    %395 = arith.addf %391, %394 : vector<2x128xf32>
    %c47 = arith.constant 47 : index
    %396 = memref.load %arg3[%c47] : memref<64xf32, #tpu.memory_space<smem>>
    %397 = vector.broadcast %396 : f32 to vector<2x128xf32>
    %398 = arith.mulf %397, %9 : vector<2x128xf32>
    %399 = arith.addf %395, %398 : vector<2x128xf32>
    %c11_62 = arith.constant 11 : index
    %400 = memref.load %arg4[%c11_62] : memref<16xf32, #tpu.memory_space<smem>>
    %401 = vector.broadcast %400 : f32 to vector<2x128xf32>
    %402 = arith.addf %399, %401 : vector<2x128xf32>
    %403 = arith.cmpf olt, %402, %370 : vector<2x128xf32>
    %404 = arith.select %403, %402, %370 : vector<2x128xi1>, vector<2x128xf32>
    %c11_i32 = arith.constant 11 : i32
    %405 = vector.broadcast %c11_i32 : i32 to vector<2x128xi32>
    %406 = arith.select %403, %405, %372 : vector<2x128xi1>, vector<2x128xi32>
    %c44_63 = arith.constant 44 : index
    %407 = memref.load %arg2[%c44_63] : memref<64xf32, #tpu.memory_space<smem>>
    %408 = vector.broadcast %407 : f32 to vector<2x128xf32>
    %409 = arith.select %403, %408, %375 : vector<2x128xi1>, vector<2x128xf32>
    %c45_64 = arith.constant 45 : index
    %410 = memref.load %arg2[%c45_64] : memref<64xf32, #tpu.memory_space<smem>>
    %411 = vector.broadcast %410 : f32 to vector<2x128xf32>
    %412 = arith.select %403, %411, %378 : vector<2x128xi1>, vector<2x128xf32>
    %c46_65 = arith.constant 46 : index
    %413 = memref.load %arg2[%c46_65] : memref<64xf32, #tpu.memory_space<smem>>
    %414 = vector.broadcast %413 : f32 to vector<2x128xf32>
    %415 = arith.select %403, %414, %381 : vector<2x128xi1>, vector<2x128xf32>
    %c47_66 = arith.constant 47 : index
    %416 = memref.load %arg2[%c47_66] : memref<64xf32, #tpu.memory_space<smem>>
    %417 = vector.broadcast %416 : f32 to vector<2x128xf32>
    %418 = arith.select %403, %417, %384 : vector<2x128xi1>, vector<2x128xf32>
    %c48 = arith.constant 48 : index
    %419 = memref.load %arg3[%c48] : memref<64xf32, #tpu.memory_space<smem>>
    %420 = vector.broadcast %419 : f32 to vector<2x128xf32>
    %421 = arith.mulf %420, %3 : vector<2x128xf32>
    %c49 = arith.constant 49 : index
    %422 = memref.load %arg3[%c49] : memref<64xf32, #tpu.memory_space<smem>>
    %423 = vector.broadcast %422 : f32 to vector<2x128xf32>
    %424 = arith.mulf %423, %5 : vector<2x128xf32>
    %425 = arith.addf %421, %424 : vector<2x128xf32>
    %c50 = arith.constant 50 : index
    %426 = memref.load %arg3[%c50] : memref<64xf32, #tpu.memory_space<smem>>
    %427 = vector.broadcast %426 : f32 to vector<2x128xf32>
    %428 = arith.mulf %427, %7 : vector<2x128xf32>
    %429 = arith.addf %425, %428 : vector<2x128xf32>
    %c51 = arith.constant 51 : index
    %430 = memref.load %arg3[%c51] : memref<64xf32, #tpu.memory_space<smem>>
    %431 = vector.broadcast %430 : f32 to vector<2x128xf32>
    %432 = arith.mulf %431, %9 : vector<2x128xf32>
    %433 = arith.addf %429, %432 : vector<2x128xf32>
    %c12_67 = arith.constant 12 : index
    %434 = memref.load %arg4[%c12_67] : memref<16xf32, #tpu.memory_space<smem>>
    %435 = vector.broadcast %434 : f32 to vector<2x128xf32>
    %436 = arith.addf %433, %435 : vector<2x128xf32>
    %437 = arith.cmpf olt, %436, %404 : vector<2x128xf32>
    %438 = arith.select %437, %436, %404 : vector<2x128xi1>, vector<2x128xf32>
    %c12_i32 = arith.constant 12 : i32
    %439 = vector.broadcast %c12_i32 : i32 to vector<2x128xi32>
    %440 = arith.select %437, %439, %406 : vector<2x128xi1>, vector<2x128xi32>
    %c48_68 = arith.constant 48 : index
    %441 = memref.load %arg2[%c48_68] : memref<64xf32, #tpu.memory_space<smem>>
    %442 = vector.broadcast %441 : f32 to vector<2x128xf32>
    %443 = arith.select %437, %442, %409 : vector<2x128xi1>, vector<2x128xf32>
    %c49_69 = arith.constant 49 : index
    %444 = memref.load %arg2[%c49_69] : memref<64xf32, #tpu.memory_space<smem>>
    %445 = vector.broadcast %444 : f32 to vector<2x128xf32>
    %446 = arith.select %437, %445, %412 : vector<2x128xi1>, vector<2x128xf32>
    %c50_70 = arith.constant 50 : index
    %447 = memref.load %arg2[%c50_70] : memref<64xf32, #tpu.memory_space<smem>>
    %448 = vector.broadcast %447 : f32 to vector<2x128xf32>
    %449 = arith.select %437, %448, %415 : vector<2x128xi1>, vector<2x128xf32>
    %c51_71 = arith.constant 51 : index
    %450 = memref.load %arg2[%c51_71] : memref<64xf32, #tpu.memory_space<smem>>
    %451 = vector.broadcast %450 : f32 to vector<2x128xf32>
    %452 = arith.select %437, %451, %418 : vector<2x128xi1>, vector<2x128xf32>
    %c52 = arith.constant 52 : index
    %453 = memref.load %arg3[%c52] : memref<64xf32, #tpu.memory_space<smem>>
    %454 = vector.broadcast %453 : f32 to vector<2x128xf32>
    %455 = arith.mulf %454, %3 : vector<2x128xf32>
    %c53 = arith.constant 53 : index
    %456 = memref.load %arg3[%c53] : memref<64xf32, #tpu.memory_space<smem>>
    %457 = vector.broadcast %456 : f32 to vector<2x128xf32>
    %458 = arith.mulf %457, %5 : vector<2x128xf32>
    %459 = arith.addf %455, %458 : vector<2x128xf32>
    %c54 = arith.constant 54 : index
    %460 = memref.load %arg3[%c54] : memref<64xf32, #tpu.memory_space<smem>>
    %461 = vector.broadcast %460 : f32 to vector<2x128xf32>
    %462 = arith.mulf %461, %7 : vector<2x128xf32>
    %463 = arith.addf %459, %462 : vector<2x128xf32>
    %c55 = arith.constant 55 : index
    %464 = memref.load %arg3[%c55] : memref<64xf32, #tpu.memory_space<smem>>
    %465 = vector.broadcast %464 : f32 to vector<2x128xf32>
    %466 = arith.mulf %465, %9 : vector<2x128xf32>
    %467 = arith.addf %463, %466 : vector<2x128xf32>
    %c13_72 = arith.constant 13 : index
    %468 = memref.load %arg4[%c13_72] : memref<16xf32, #tpu.memory_space<smem>>
    %469 = vector.broadcast %468 : f32 to vector<2x128xf32>
    %470 = arith.addf %467, %469 : vector<2x128xf32>
    %471 = arith.cmpf olt, %470, %438 : vector<2x128xf32>
    %472 = arith.select %471, %470, %438 : vector<2x128xi1>, vector<2x128xf32>
    %c13_i32 = arith.constant 13 : i32
    %473 = vector.broadcast %c13_i32 : i32 to vector<2x128xi32>
    %474 = arith.select %471, %473, %440 : vector<2x128xi1>, vector<2x128xi32>
    %c52_73 = arith.constant 52 : index
    %475 = memref.load %arg2[%c52_73] : memref<64xf32, #tpu.memory_space<smem>>
    %476 = vector.broadcast %475 : f32 to vector<2x128xf32>
    %477 = arith.select %471, %476, %443 : vector<2x128xi1>, vector<2x128xf32>
    %c53_74 = arith.constant 53 : index
    %478 = memref.load %arg2[%c53_74] : memref<64xf32, #tpu.memory_space<smem>>
    %479 = vector.broadcast %478 : f32 to vector<2x128xf32>
    %480 = arith.select %471, %479, %446 : vector<2x128xi1>, vector<2x128xf32>
    %c54_75 = arith.constant 54 : index
    %481 = memref.load %arg2[%c54_75] : memref<64xf32, #tpu.memory_space<smem>>
    %482 = vector.broadcast %481 : f32 to vector<2x128xf32>
    %483 = arith.select %471, %482, %449 : vector<2x128xi1>, vector<2x128xf32>
    %c55_76 = arith.constant 55 : index
    %484 = memref.load %arg2[%c55_76] : memref<64xf32, #tpu.memory_space<smem>>
    %485 = vector.broadcast %484 : f32 to vector<2x128xf32>
    %486 = arith.select %471, %485, %452 : vector<2x128xi1>, vector<2x128xf32>
    %c56 = arith.constant 56 : index
    %487 = memref.load %arg3[%c56] : memref<64xf32, #tpu.memory_space<smem>>
    %488 = vector.broadcast %487 : f32 to vector<2x128xf32>
    %489 = arith.mulf %488, %3 : vector<2x128xf32>
    %c57 = arith.constant 57 : index
    %490 = memref.load %arg3[%c57] : memref<64xf32, #tpu.memory_space<smem>>
    %491 = vector.broadcast %490 : f32 to vector<2x128xf32>
    %492 = arith.mulf %491, %5 : vector<2x128xf32>
    %493 = arith.addf %489, %492 : vector<2x128xf32>
    %c58 = arith.constant 58 : index
    %494 = memref.load %arg3[%c58] : memref<64xf32, #tpu.memory_space<smem>>
    %495 = vector.broadcast %494 : f32 to vector<2x128xf32>
    %496 = arith.mulf %495, %7 : vector<2x128xf32>
    %497 = arith.addf %493, %496 : vector<2x128xf32>
    %c59 = arith.constant 59 : index
    %498 = memref.load %arg3[%c59] : memref<64xf32, #tpu.memory_space<smem>>
    %499 = vector.broadcast %498 : f32 to vector<2x128xf32>
    %500 = arith.mulf %499, %9 : vector<2x128xf32>
    %501 = arith.addf %497, %500 : vector<2x128xf32>
    %c14_77 = arith.constant 14 : index
    %502 = memref.load %arg4[%c14_77] : memref<16xf32, #tpu.memory_space<smem>>
    %503 = vector.broadcast %502 : f32 to vector<2x128xf32>
    %504 = arith.addf %501, %503 : vector<2x128xf32>
    %505 = arith.cmpf olt, %504, %472 : vector<2x128xf32>
    %506 = arith.select %505, %504, %472 : vector<2x128xi1>, vector<2x128xf32>
    %c14_i32 = arith.constant 14 : i32
    %507 = vector.broadcast %c14_i32 : i32 to vector<2x128xi32>
    %508 = arith.select %505, %507, %474 : vector<2x128xi1>, vector<2x128xi32>
    %c56_78 = arith.constant 56 : index
    %509 = memref.load %arg2[%c56_78] : memref<64xf32, #tpu.memory_space<smem>>
    %510 = vector.broadcast %509 : f32 to vector<2x128xf32>
    %511 = arith.select %505, %510, %477 : vector<2x128xi1>, vector<2x128xf32>
    %c57_79 = arith.constant 57 : index
    %512 = memref.load %arg2[%c57_79] : memref<64xf32, #tpu.memory_space<smem>>
    %513 = vector.broadcast %512 : f32 to vector<2x128xf32>
    %514 = arith.select %505, %513, %480 : vector<2x128xi1>, vector<2x128xf32>
    %c58_80 = arith.constant 58 : index
    %515 = memref.load %arg2[%c58_80] : memref<64xf32, #tpu.memory_space<smem>>
    %516 = vector.broadcast %515 : f32 to vector<2x128xf32>
    %517 = arith.select %505, %516, %483 : vector<2x128xi1>, vector<2x128xf32>
    %c59_81 = arith.constant 59 : index
    %518 = memref.load %arg2[%c59_81] : memref<64xf32, #tpu.memory_space<smem>>
    %519 = vector.broadcast %518 : f32 to vector<2x128xf32>
    %520 = arith.select %505, %519, %486 : vector<2x128xi1>, vector<2x128xf32>
    %c60 = arith.constant 60 : index
    %521 = memref.load %arg3[%c60] : memref<64xf32, #tpu.memory_space<smem>>
    %522 = vector.broadcast %521 : f32 to vector<2x128xf32>
    %523 = arith.mulf %522, %3 : vector<2x128xf32>
    %c61 = arith.constant 61 : index
    %524 = memref.load %arg3[%c61] : memref<64xf32, #tpu.memory_space<smem>>
    %525 = vector.broadcast %524 : f32 to vector<2x128xf32>
    %526 = arith.mulf %525, %5 : vector<2x128xf32>
    %527 = arith.addf %523, %526 : vector<2x128xf32>
    %c62 = arith.constant 62 : index
    %528 = memref.load %arg3[%c62] : memref<64xf32, #tpu.memory_space<smem>>
    %529 = vector.broadcast %528 : f32 to vector<2x128xf32>
    %530 = arith.mulf %529, %7 : vector<2x128xf32>
    %531 = arith.addf %527, %530 : vector<2x128xf32>
    %c63 = arith.constant 63 : index
    %532 = memref.load %arg3[%c63] : memref<64xf32, #tpu.memory_space<smem>>
    %533 = vector.broadcast %532 : f32 to vector<2x128xf32>
    %534 = arith.mulf %533, %9 : vector<2x128xf32>
    %535 = arith.addf %531, %534 : vector<2x128xf32>
    %c15_82 = arith.constant 15 : index
    %536 = memref.load %arg4[%c15_82] : memref<16xf32, #tpu.memory_space<smem>>
    %537 = vector.broadcast %536 : f32 to vector<2x128xf32>
    %538 = arith.addf %535, %537 : vector<2x128xf32>
    %539 = arith.cmpf olt, %538, %506 : vector<2x128xf32>
    %c15_i32 = arith.constant 15 : i32
    %540 = vector.broadcast %c15_i32 : i32 to vector<2x128xi32>
    %541 = arith.select %539, %540, %508 : vector<2x128xi1>, vector<2x128xi32>
    %c60_83 = arith.constant 60 : index
    %542 = memref.load %arg2[%c60_83] : memref<64xf32, #tpu.memory_space<smem>>
    %543 = vector.broadcast %542 : f32 to vector<2x128xf32>
    %544 = arith.select %539, %543, %511 : vector<2x128xi1>, vector<2x128xf32>
    %c61_84 = arith.constant 61 : index
    %545 = memref.load %arg2[%c61_84] : memref<64xf32, #tpu.memory_space<smem>>
    %546 = vector.broadcast %545 : f32 to vector<2x128xf32>
    %547 = arith.select %539, %546, %514 : vector<2x128xi1>, vector<2x128xf32>
    %c62_85 = arith.constant 62 : index
    %548 = memref.load %arg2[%c62_85] : memref<64xf32, #tpu.memory_space<smem>>
    %549 = vector.broadcast %548 : f32 to vector<2x128xf32>
    %550 = arith.select %539, %549, %517 : vector<2x128xi1>, vector<2x128xf32>
    %c63_86 = arith.constant 63 : index
    %551 = memref.load %arg2[%c63_86] : memref<64xf32, #tpu.memory_space<smem>>
    %552 = vector.broadcast %551 : f32 to vector<2x128xf32>
    %553 = arith.select %539, %552, %520 : vector<2x128xi1>, vector<2x128xf32>
    %554 = vector.shape_cast %544 : vector<2x128xf32> to vector<1x2x128xf32>
    %555 = vector.shape_cast %547 : vector<2x128xf32> to vector<1x2x128xf32>
    %556 = vector.shape_cast %550 : vector<2x128xf32> to vector<1x2x128xf32>
    %557 = vector.shape_cast %553 : vector<2x128xf32> to vector<1x2x128xf32>
    %558 = tpu.concatenate %554, %555, %556, %557 in 0 : vector<1x2x128xf32>, vector<1x2x128xf32>, vector<1x2x128xf32>, vector<1x2x128xf32> -> vector<4x2x128xf32>
    %559 = vector.shape_cast %558 : vector<4x2x128xf32> to vector<1x4x2x128xf32>
    %c0_87 = arith.constant 0 : index
    %c0_88 = arith.constant 0 : index
    %c0_89 = arith.constant 0 : index
    %c0_90 = arith.constant 0 : index
    %560 = vector.load %arg6[%c0_87, %c0_88, %c0_89, %c0_90] : memref<1x4x2x128xf32, #tpu.memory_space<vmem>>, vector<1x4x2x128xf32>
    tpu.vector_store %arg6[%c0_87, %c0_88, %c0_89, %c0_90], %559 {strides = array<i32>} : memref<1x4x2x128xf32, #tpu.memory_space<vmem>>, vector<1x4x2x128xf32>,
    %561 = vector.shape_cast %541 : vector<2x128xi32> to vector<1x2x128xi32>
    %c0_91 = arith.constant 0 : index
    %c0_92 = arith.constant 0 : index
    %c0_93 = arith.constant 0 : index
    %562 = vector.load %arg7[%c0_91, %c0_92, %c0_93] : memref<1x2x128xi32, #tpu.memory_space<vmem>>, vector<1x2x128xi32>
    tpu.vector_store %arg7[%c0_91, %c0_92, %c0_93], %561 {strides = array<i32>} : memref<1x2x128xi32, #tpu.memory_space<vmem>>, vector<1x2x128xi32>,
    return
  }
  func.func @transform_0(%arg0: i32, %arg1: i32) -> i32 {
    %c0_i32 = arith.constant 0 : i32
    %c0_i32_0 = arith.constant 0 : i32
    return %c0_i32 : i32
  }
  func.func @transform_1(%arg0: i32, %arg1: i32) -> i32 {
    %c0_i32 = arith.constant 0 : i32
    %c0_i32_0 = arith.constant 0 : i32
    return %c0_i32 : i32
  }
  func.func @transform_2(%arg0: i32, %arg1: i32) -> i32 {
    %c0_i32 = arith.constant 0 : i32
    %c0_i32_0 = arith.constant 0 : i32
    return %c0_i32 : i32
  }
  func.func @transform_3(%arg0: i32, %arg1: i32) -> (i32, i32, i32, i32) {
    %c0_i32 = arith.constant 0 : i32
    %c0_i32_0 = arith.constant 0 : i32
    %c0_i32_1 = arith.constant 0 : i32
    return %arg0, %c0_i32, %arg1, %c0_i32_0 : i32, i32, i32, i32
  }
  func.func @transform_4(%arg0: i32, %arg1: i32) -> (i32, i32, i32, i32) {
    %c0_i32 = arith.constant 0 : i32
    %c0_i32_0 = arith.constant 0 : i32
    %c0_i32_1 = arith.constant 0 : i32
    return %arg0, %c0_i32, %arg1, %c0_i32_0 : i32, i32, i32, i32
  }
  func.func @transform_5(%arg0: i32, %arg1: i32) -> (i32, i32, i32) {
    %c0_i32 = arith.constant 0 : i32
    %c0_i32_0 = arith.constant 0 : i32
    return %arg0, %arg1, %c0_i32 : i32, i32, i32
  }
}

</mosaic_0001>

<bundles_post_ra>
// kernel: vector_quantizer_forward.1
= control target key start
LH: loop header
LB: loop body
LE: loop exit
PB: predicated region body
PF: predicated region fallthrough
CT: control target
= control target key end

     0   :  { %s2148_s0 = inlined_call_operand.vmem [shape: f32[64], index: 0, kind: input, shape index: {}]   ;;  %s2149_s1 = inlined_call_operand.vmem [shape: f32[64], index: 1, kind: input, shape index: {}]   ;;  %s2150_s2 = inlined_call_operand.vmem [shape: f32[16], index: 2, kind: input, shape index: {}]   ;;  %s2151_s3 = inlined_call_operand.vmem [shape: f32[2,4,2,128], index: 3, kind: input, shape index: {}]   ;;  %s2152_s4 = inlined_call_operand.vmem [shape: f32[2,4,2,128], index: 4, kind: output, shape index: {0}]   ;;  %s2153_s5 = inlined_call_operand.vmem [shape: s32[2,2,128], index: 5, kind: output, shape index: {1}]  }
   0x1   :  { %2159 = sst [smem:[#allocation37_spill]] %s2148_s0 }
   0x2   :  { %2160 = sst [smem:[#allocation38_spill]] %s2149_s1 }
   0x3   :  { %2161 = sst [smem:[#allocation39_spill]] %s2150_s2 }
   0x4   :  { %2162 = sst [smem:[#allocation40_spill]] %s2151_s3 }
   0x5   :  { %2163 = sst [smem:[#allocation41_spill]] %s2152_s4 }
   0x6   :  { %2164 = sst [smem:[#allocation42_spill]] %s2153_s5 }
   0x7   :  { %11 = vsyncpa [#allocation3], 0 }
   0x8   :  { %12 = vsyncpa [#allocation5], 0  ;;  %s1331_s18 = smov 0   ;;  %s1333_s19 = smov 0  }
   0x9   :  { %s1335_s20 = smov 0  }
   0xa LB: > { %2165 = sst [smem:[#allocation9_spill]] %s1291_s19  ;;  %s1003_s24 = sadd.s32 4294967295, %s1295_s20   ;;  %s1295_s20 = sphi %s1335_s20, %s18_s20   ;;  %s1291_s19 = sphi %s1333_s19, %s2269_s19   ;;  %s1287_s18 = sphi %s1331_s18, %s2268_s18  }
   0xb   : > { %2166 = sst [smem:[#allocation10_spill]] %s1295_s20  ;;  %p1005_p0 = scmp.ge.s32.totalorder %s1295_s20, 1 }
   0xc   : > { %s2167_s1 = sld [smem:[#allocation38_spill]]  ;;  %p182_p1 = scmp.lt.s32.totalorder %s1295_s20, 3 }
   0xd   : > { %p1352_p2 = scmp.eq.s32.totalorder %s1003_s24, 0  ;;  %s30_s27 = sadd.s32 1, %s1291_s19 }
   0xe   : > { %p1356_p3 = pnand %p1005_p0, %p182_p1  ;;  %s2170_s0 = sld [smem:[#allocation37_spill]] }
   0xf   : > { %p32_p6 = scmp.ge.s32.totalorder %s30_s27, 2  ;;  %s2171_s2 = sld [smem:[#allocation39_spill]] }
  0x10   : > { %p1176_p4 = pneg %p1356_p3  ;;  %s1297_s9 = smov [#allocation4]  }
  0x11   : > { %s2271_s27 = smov (%p32_p6, %s30_s27), 0  ;;  %s1298_s10 = smov [#allocation2]  }
  0x12   : > { %s204_s23 = sshll.u32 %s2167_s1, 4  ;;  %p1177_p5 = pnand %p1352_p2, %p1176_p4  ;;  %s205_s23 = int_to_ptr.vmem [resolvable:$true] %s204_s23 }
  0x13   : > { %2172 = sst [smem:[#allocation11_spill]] %s2271_s27  ;;  %s1299_s11 = smov [#allocation6]  }
  0x14   : > { %s194_s30 = sshll.u32 %s2170_s0, 4  ;;  %238 = sbr.rel (%p1356_p3) target bundleno = 251 (0xfb), region = 36  ;;  %s195_s30 = int_to_ptr.vmem [resolvable:$true] %s194_s30 }
  0x15   : > { %s214_s8 = sshll.u32 %s2171_s2, 4  ;;  %s215_s8 = int_to_ptr.vmem [resolvable:$true] %s214_s8 }
  0x16   : > { %1182 = dma.vmem_to_smem (!%p1177_p5), %s205_s23, 16, %s1297_s9, [#allocation5]  }
  0x17   : > { %1179 = dma.vmem_to_smem (!%p1177_p5), %s195_s30, 16, %s1298_s10, [#allocation3]  }
  0x18   : > { %1185 = dma.vmem_to_smem (!%p1177_p5), %s215_s8, 16, %s1299_s11, [#allocation5]  }
  0x19   : > { %1278 = dma.done.wait (%p1352_p2), [#allocation3], 16  }
  0x1a   : > { %1280 = vsyncadd (%p1352_p2), [#allocation3], 4294967280 }
  0x1b   : > { %1282 = dma.done.wait (%p1352_p2), [#allocation5], 32  }
  0x1c   : > { %1284 = vsyncadd (%p1352_p2), [#allocation5], 4294967264 }
  0x1d   : > { %255 = sfence }
  0x1e   : > { %p291_p7 = scmp.lt.s32.totalorder %s1287_s18, 1  ;;  %s1384_s12 = sld [smem:[#allocation4]] }
  0x1f   : > { %s1386_s13 = sld [smem:[#allocation4 + $0x1]] }
  0x20   : > { %s2273_s18 = smov (!%p291_p7, %s1287_s18), 1  ;;  %s1391_s14 = sld [smem:[#allocation4 + $0x2]] }
  0x21   : > { %2173 = sst [smem:[#allocation12_spill]] %s2273_s18 }
  0x22   : > { %s1393_s15 = sld [smem:[#allocation4 + $0x3]] }
  0x23   : > { %s1395_s16 = sld [smem:[#allocation6]] }
  0x24   : > { %s1397_s17 = sld [smem:[#allocation2]]  ;;  %v319_v2 = vstv %s1384_s12 }
  0x25   : > { %s1399_s21 = sld [smem:[#allocation2 + $0x1]]  ;;  %v322_v3 = vstv %s1386_s13 }
  0x26   : > { %s1401_s22 = sld [smem:[#allocation2 + $0x2]]  ;;  %v326_v11 = vstv %s1391_s14 }
  0x27   : > { %s1403_s23 = sld [smem:[#allocation2 + $0x3]] }
  0x28   : > { %s1405_s24 = sld [smem:[#allocation4 + $0x4]]  ;;  %v330_v20 = vstv %s1393_s15 }
  0x29   : > { %s1407_s25 = sld [smem:[#allocation4 + $0x5]]  ;;  %v334_v38 = vstv %s1395_s16 }
  0x2a   : > { %2174 = sst [smem:[#allocation13_spill]] %s1397_s17 }
  0x2b   : > { %2175 = sst [smem:[#allocation14_spill]] %s1399_s21 }
  0x2c   : > { %2176 = sst [smem:[#allocation15_spill]] %s1401_s22  ;;  %s2158_s22 = sshll.u32 %s2273_s18, 3 }
  0x2d   : > { %2177 = sst [smem:[#allocation16_spill]] %s1403_s23 }
  0x2e   : > { %s1409_s26 = sld [smem:[#allocation4 + $0x6]]  ;;  %v349_v4 = vstv %s1405_s24 }
  0x2f   : > { %s1411_s28 = sld [smem:[#allocation4 + $0x7]]  ;;  %v352_v5 = vstv %s1407_s25 }
  0x30   : > { %s1413_s29 = sld [smem:[#allocation6 + $0x1]] }
  0x31   : > { %s1415_s30 = sld [smem:[#allocation2 + $0x4]] }
  0x32   : > { %s1417_s6 = sld [smem:[#allocation2 + $0x5]] }
  0x33   : > { %s1419_s7 = sld [smem:[#allocation2 + $0x6]] }
  0x34   : > { %s1421_s8 = sld [smem:[#allocation2 + $0x7]]  ;;  %v356_v12 = vstv %s1409_s26 }
  0x35   : > { %s1423_s9 = sld [smem:[#allocation4 + $0x8]]  ;;  %v360_v21 = vstv %s1411_s28 }
  0x36   : > { %s1425_s10 = sld [smem:[#allocation4 + $0x9]]  ;;  %v364_v39 = vstv %s1413_s29 }
  0x37   : > { %2178 = sst [smem:[#allocation17_spill]] %s1415_s30 }
  0x38   : > { %2179 = sst [smem:[#allocation18_spill]] %s1417_s6 }
  0x39   : > { %2180 = sst [smem:[#allocation19_spill]] %s1419_s7 }
  0x3a   : > { %2181 = sst [smem:[#allocation20_spill]] %s1421_s8 }
  0x3b   : > { %s1427_s11 = sld [smem:[#allocation4 + $0xa]]  ;;  %v382_v13 = vstv %s1423_s9 }
  0x3c   : > { %s1429_s0 = sld [smem:[#allocation4 + $0xb]]  ;;  %v385_v14 = vstv %s1425_s10 }
  0x3d   : > { %s1431_s1 = sld [smem:[#allocation6 + $0x2]] }
  0x3e   : > { %s1433_s2 = sld [smem:[#allocation2 + $0x8]] }
  0x3f   : > { %s1435_s27 = sld [smem:[#allocation2 + $0x9]] }
  0x40   : > { %s1437_s19 = sld [smem:[#allocation2 + $0xa]] }
  0x41   : > { %s1439_s20 = sld [smem:[#allocation2 + $0xb]]  ;;  %v389_v24 = vstv %s1427_s11 }
  0x42   : > { %s1441_s5 = sld [smem:[#allocation4 + $0xc]]  ;;  %v393_v33 = vstv %s1429_s0 }
  0x43   : > { %2182 = sst [smem:[#allocation21_spill]] %s1431_s1 }
  0x44   : > { %2183 = sst [smem:[#allocation22_spill]] %s1433_s2 }
  0x45   : > { %2184 = sst [smem:[#allocation23_spill]] %s1435_s27 }
  0x46   : > { %2185 = sst [smem:[#allocation24_spill]] %s1437_s19 }
  0x47   : > { %2186 = sst [smem:[#allocation25_spill]] %s1439_s20 }
  0x48   : > { %s1443_s4 = sld [smem:[#allocation4 + $0xd]]  ;;  %v415_v29 = vstv %s1441_s5 }
  0x49   : > { %s1445_s8 = sld [smem:[#allocation4 + $0xe]] }
  0x4a   : > { %s1447_s7 = sld [smem:[#allocation4 + $0xf]] }
  0x4b   : > { %s1449_s6 = sld [smem:[#allocation6 + $0x3]] }
  0x4c   : > { %s1451_s30 = sld [smem:[#allocation2 + $0xc]] }
  0x4d   : > { %s1453_s2 = sld [smem:[#allocation2 + $0xd]] }
  0x4e   : > { %s1455_s27 = sld [smem:[#allocation2 + $0xe]]  ;;  %v418_v30 = vstv %s1443_s4 }
  0x4f   : > { %s1457_s20 = sld [smem:[#allocation2 + $0xf]]  ;;  %v422_v40 = vstv %s1445_s8 }
  0x50   : > { %2187 = sst [smem:[#allocation26_spill]] %s1447_s7 }
  0x51   : > { %2188 = sst [smem:[#allocation27_spill]] %s1449_s6 }
  0x52   : > { %2189 = sst [smem:[#allocation28_spill]] %s1451_s30 }
  0x53   : > { %2190 = sst [smem:[#allocation29_spill]] %s1453_s2 }
  0x54   : > { %2191 = sst [smem:[#allocation30_spill]] %s1455_s27 }
  0x55   : > { %2192 = sst [smem:[#allocation31_spill]] %s1457_s20 }
  0x56   : > { %s1459_s19 = sld [smem:[#allocation4 + $0x10]] }
  0x57   : > { %s1461_s23 = sld [smem:[#allocation4 + $0x11]] }
  0x58   : > { %s1464_s21 = sld [smem:[#allocation4 + $0x12]] }
  0x59   : > { %s1466_s6 = sld [smem:[#allocation4 + $0x13]] }
  0x5a   : > { %s1468_s30 = sld [smem:[#allocation6 + $0x4]] }
  0x5b   : > { %s2193_s3 = sld [smem:[#allocation40_spill]] }
  0x5c   : > { %s1477_s20 = sld [smem:[#allocation2 + $0x10]]  ;;  %v448_v43 = vstv %s1459_s19 }
  0x5d   : > { %s1479_s1 = sld [smem:[#allocation2 + $0x11]]  ;;  %v451_v44 = vstv %s1461_s23 }
  0x5e   : > { %s1481_s7 = sld [smem:[#allocation2 + $0x12]]  ;;  %v455_v54 = vstv %s1464_s21 }
  0x5f   : > { %s1489_s18 = sld [smem:[#allocation2 + $0x13]] }
  0x60   : > { %s1495_s2 = sld [smem:[#allocation4 + $0x14]] }
  0x61   : > { %s1475_s27 = scalar_lea.vmem %s2193_s3, %s2158_s22  ;;  %s1497_s17 = sld [smem:[#allocation4 + $0x15]] }
  0x62   : > { %v1484_v0 = vld [vmem:[%s1475_s27] sm:$0x3]  ;;  %v1487_v1 = vld [vmem:[%s1475_s27 + $0x2] sm:$0x3]  ;;  %s1499_s22 = sld [smem:[#allocation4 + $0x16]] }
  0x63   : > { %v320_v6 = vmul.f32 %v319_v2, %v1484_v0  ;;  %v323_v7 = vmul.f32 %v322_v3, %v1487_v1  ;;  %v350_v8 = vmul.f32 %v349_v4, %v1484_v0  ;;  %v353_v9 = vmul.f32 %v352_v5, %v1487_v1  ;;  %s1505_s12 = sld [smem:[#allocation4 + $0x17]]  ;;  %v1508_v10 = vld [vmem:[%s1475_s27 + $0x4] sm:$0x3]  ;;  %v1525_v19 = vld [vmem:[%s1475_s27 + $0x6] sm:$0x3] }
  0x64   : > { %s1512_s13 = sld [smem:[#allocation6 + $0x5]]  ;;  %v327_v16 = vmul.f32 %v326_v11, %v1508_v10  ;;  %v357_v18 = vmul.f32 %v356_v12, %v1508_v10  ;;  %v383_v22 = vmul.f32 %v382_v13, %v1484_v0  ;;  %v386_v23 = vmul.f32 %v385_v14, %v1487_v1 }
  0x65   : > { %s1514_s24 = sld [smem:[#allocation2 + $0x14]]  ;;  %v324_v15 = vadd.f32 %v323_v7, %v320_v6  ;;  %v354_v17 = vadd.f32 %v353_v9, %v350_v8  ;;  %v331_v26 = vmul.f32 %v330_v20, %v1525_v19  ;;  %v361_v28 = vmul.f32 %v360_v21, %v1525_v19 }
  0x66   : > { %s1518_s25 = sld [smem:[#allocation2 + $0x15]]  ;;  %v387_v31 = vadd.f32 %v386_v23, %v383_v22  ;;  %v390_v32 = vmul.f32 %v389_v24, %v1508_v10  ;;  %v416_v36 = vmul.f32 %v415_v29, %v1484_v0  ;;  %v419_v37 = vmul.f32 %v418_v30, %v1487_v1 }
  0x67   : > { %s1522_s3 = sld [smem:[#allocation2 + $0x16]]  ;;  %v328_v25 = vadd.f32 %v327_v16, %v324_v15  ;;  %v358_v27 = vadd.f32 %v357_v18, %v354_v17  ;;  %v394_v42 = vmul.f32 %v393_v33, %v1525_v19  ;;  %v423_v48 = vmul.f32 %v422_v40, %v1508_v10 }
  0x68   : > { %s1529_s14 = sld [smem:[#allocation2 + $0x17]]  ;;  %v391_v41 = vadd.f32 %v390_v32, %v387_v31  ;;  %v420_v47 = vadd.f32 %v419_v37, %v416_v36  ;;  %v449_v51 = vmul.f32 %v448_v43, %v1484_v0  ;;  %v452_v52 = vmul.f32 %v451_v44, %v1487_v1 }
  0x69   : > { %s1533_s26 = sld [smem:[#allocation4 + $0x18]]  ;;  %v332_v34 = vadd.f32 %v331_v26, %v328_v25  ;;  %v362_v35 = vadd.f32 %v361_v28, %v358_v27  ;;  %v481_v58 = vstv %s1495_s2  ;;  %v484_v59 = vstv %s1497_s17 }
  0x6a   : > { %s1536_s9 = sld [smem:[#allocation4 + $0x19]]  ;;  %v395_v50 = vadd.f32 %v394_v42, %v391_v41  ;;  %v424_v56 = vadd.f32 %v423_v48, %v420_v47  ;;  %v453_v61 = vadd.f32 %v452_v52, %v449_v51  ;;  %v456_v62 = vmul.f32 %v455_v54, %v1508_v10 }
  0x6b   : > { %s1540_s27 = sld [smem:[#allocation4 + $0x1a]]  ;;  %v335_v45 = vadd.f32 %v334_v38, %v332_v34  ;;  %v365_v46 = vadd.f32 %v364_v39, %v362_v35  ;;  %v459_v2 = vstv %s1466_s6  ;;  %v482_v4 = vmul.f32 %v481_v58, %v1484_v0 }
  0x6c   : > { %2194 = sst [smem:[#allocation32_spill]] %s1518_s25  ;;  %v485_v5 = vmul.f32 %v484_v59, %v1487_v1  ;;  %v488_v9 = vstv %s1499_s22  ;;  %v457_v13 = vadd.f32 %v456_v62, %v453_v61  ;;  %v460_v14 = vmul.f32 %v459_v2, %v1525_v19 }
  0x6d   : > { %2195 = sst [smem:[#allocation33_spill]] %s1522_s3  ;;  %vm1582_vm0 = vcmp.lt.f32.partialorder %v365_v46, %v335_v45  ;;  %v489_v23 = vmul.f32 %v488_v9, %v1508_v10  ;;  %v492_v27 = vstv %s1505_s12  ;;  %v1300_v28 = vmov 0  }
  0x6e   : > { %2196 = sst [smem:[#allocation34_spill]] %s1529_s14  ;;  %v367_v63 = vsel %vm1582_vm0, %v365_v46, %v335_v45  ;;  %v486_v22 = vadd.f32 %v485_v5, %v482_v4  ;;  %v368_v29 = vsel %vm1582_vm0, 1, %v1300_v28  ;;  %v461_v30 = vadd.f32 %v460_v14, %v457_v13 }
  0x6f   : > { %s1544_s15 = sld [smem:[#allocation4 + $0x1b]]  ;;  %v514_v17 = vstv %s1533_s26  ;;  %v463_v35 = vstv %s1468_s30  ;;  %v493_v40 = vmul.f32 %v492_v27, %v1525_v19  ;;  %v496_v59 = vstv %s1512_s13 }
  0x70   : > { %s1547_s28 = sld [smem:[#allocation6 + $0x6]]  ;;  %v517_v18 = vstv %s1536_s9  ;;  %v515_v31 = vmul.f32 %v514_v17, %v1484_v0  ;;  %v490_v39 = vadd.f32 %v489_v23, %v486_v22  ;;  %v464_v46 = vadd.f32 %v463_v35, %v461_v30 }
  0x71   : > { %s1550_s10 = sld [smem:[#allocation2 + $0x18]]  ;;  %v518_v32 = vmul.f32 %v517_v18, %v1487_v1  ;;  %v521_v36 = vstv %s1540_s27  ;;  %v469_v30 = vstv %s1477_s20 }
  0x72   : > { %s1554_s5 = sld [smem:[#allocation2 + $0x19]]  ;;  %v522_v48 = vmul.f32 %v521_v36, %v1508_v10  ;;  %v494_v54 = vadd.f32 %v493_v40, %v490_v39  ;;  %v478_v39 = vstv %s1489_s18 }
  0x73   : > { %s2199_s4 = sld [smem:[#allocation26_spill]]  ;;  %v519_v47 = vadd.f32 %v518_v32, %v515_v31 }
  0x74   : > { %s1559_s11 = sld [smem:[#allocation2 + $0x1a]] }
  0x75   : > { %s2201_s0 = sld [smem:[#allocation21_spill]]  ;;  %v525_v52 = vstv %s1544_s15 }
  0x76   : > { %s1562_s14 = sld [smem:[#allocation2 + $0x1b]]  ;;  %v526_v2 = vmul.f32 %v525_v52, %v1525_v19  ;;  %v529_v23 = vstv %s1547_s28 }
  0x77   : > { %2197 = sst [smem:[#allocation35_spill]] %s1550_s10 }
  0x78   : > { %2198 = sst [smem:[#allocation36_spill]] %s1554_s5 }
  0x79   : > { %s1566_s10 = sld [smem:[#allocation4 + $0x1c]]  ;;  %v426_v49 = vstv %s2199_s4 }
  0x7a   : > { %2200 = sst [smem:[#allocation26_spill]] %s1559_s11  ;;  %v427_v57 = vmul.f32 %v426_v49, %v1525_v19 }
  0x7b   : > { %s1569_s16 = sld [smem:[#allocation4 + $0x1d]]  ;;  %v397_v53 = vstv %s2201_s0 }
  0x7c   : > { %2202 = sst [smem:[#allocation21_spill]] %s1562_s14  ;;  %v398_v60 = vadd.f32 %v397_v53, %v395_v50  ;;  %v428_v3 = vadd.f32 %v427_v57, %v424_v56 }
  0x7d   : > { %s1572_s29 = sld [smem:[#allocation4 + $0x1e]] }
  0x7e   : > { %s1576_s19 = sld [smem:[#allocation4 + $0x1f]]  ;;  %vm1612_vm1 = vcmp.lt.f32.partialorder %v398_v60, %v367_v63 }
  0x7f   : > { %s1580_s23 = sld [smem:[#allocation6 + $0x7]]  ;;  %v400_v26 = vsel %vm1612_vm1, %v398_v60, %v367_v63  ;;  %v547_v43 = vstv %s1566_s10  ;;  %v401_v53 = vsel %vm1612_vm1, 2, %v368_v29  ;;  %v523_v63 = vadd.f32 %v522_v48, %v519_v47 }
  0x80   : > { %s2205_s8 = sld [smem:[#allocation13_spill]]  ;;  %v548_v55 = vmul.f32 %v547_v43, %v1484_v0 }
  0x81   : > { %s1587_s4 = sld [smem:[#allocation2 + $0x1c]]  ;;  %v550_v44 = vstv %s1569_s16  ;;  %v527_v17 = vadd.f32 %v526_v2, %v523_v63 }
  0x82   : > { %s2207_s14 = sld [smem:[#allocation14_spill]]  ;;  %v551_v56 = vmul.f32 %v550_v44, %v1487_v1 }
  0x83   : > { %s2208_s11 = sld [smem:[#allocation27_spill]]  ;;  %v554_v60 = vstv %s1572_s29 }
  0x84   : > { %s1591_s5 = sld [smem:[#allocation2 + $0x1d]]  ;;  %v552_v9 = vadd.f32 %v551_v56, %v548_v55 }
  0x85   : > { %s2210_s21 = sld [smem:[#allocation15_spill]]  ;;  %v562_v47 = vstv %s1580_s23 }
  0x86   : > { %s1594_s0 = sld [smem:[#allocation2 + $0x1e]]  ;;  %v337_v6 = vstv %s2205_s8 }
  0x87   : > { %2206 = sst [smem:[#allocation13_spill]] %s1587_s4 }
  0x88   : > { %s2212_s3 = sld [smem:[#allocation16_spill]]  ;;  %v340_v7 = vstv %s2207_s14 }
  0x89   : > { %s1599_s4 = sld [smem:[#allocation2 + $0x1f]]  ;;  %v430_v8 = vstv %s2208_s11 }
  0x8a   : > { %2209 = sst [smem:[#allocation14_spill]] %s1591_s5  ;;  %v431_v21 = vadd.f32 %v430_v8, %v428_v3  ;;  %v497_v8 = vadd.f32 %v496_v59, %v494_v54  ;;  %v502_v54 = vstv %s1514_s24 }
  0x8b   : > { %s2214_s2 = sld [smem:[#allocation17_spill]]  ;;  %v343_v11 = vstv %s2210_s21 }
  0x8c   : > { %2211 = sst [smem:[#allocation27_spill]] %s1594_s0  ;;  %vm1652_vm2 = vcmp.lt.f32.partialorder %v431_v21, %v400_v26 }
  0x8d   : > { %s1603_s17 = sld [smem:[#allocation4 + $0x20]]  ;;  %v433_v51 = vsel %vm1652_vm2, %v431_v21, %v400_v26 }
  0x8e   : > { %s2215_s5 = sld [smem:[#allocation18_spill]]  ;;  %v346_v15 = vstv %s2212_s3  ;;  %vm1693_vm3 = vcmp.lt.f32.partialorder %v464_v46, %v433_v51 }
  0x8f   : > { %2213 = sst [smem:[#allocation15_spill]] %s1599_s4  ;;  %v466_v12 = vsel %vm1693_vm3, %v464_v46, %v433_v51 }
  0x90   : > { %s1609_s0 = sld [smem:[#allocation4 + $0x21]]  ;;  %vm1734_vm4 = vcmp.lt.f32.partialorder %v497_v8, %v466_v12 }
  0x91   : > { %s2216_s6 = sld [smem:[#allocation19_spill]]  ;;  %v370_v16 = vstv %s2214_s2  ;;  %v499_v38 = vsel %vm1734_vm4, %v497_v8, %v466_v12 }
  0x92   : > { %s2217_s4 = sld [smem:[#allocation20_spill]]  ;;  %v371_v33 = vsel %vm1582_vm0, %v370_v16, %v337_v6  ;;  %v434_v16 = vsel %vm1652_vm2, 3, %v401_v53 }
  0x93   : > { %s1617_s25 = sld [smem:[#allocation4 + $0x22]]  ;;  %v580_v5 = vstv %s1603_s17 }
  0x94   : > { %s1623_s22 = sld [smem:[#allocation4 + $0x23]]  ;;  %v373_v20 = vstv %s2215_s5  ;;  %v581_v18 = vmul.f32 %v580_v5, %v1484_v0 }
  0x95   : > { %s1627_s14 = sld [smem:[#allocation6 + $0x8]]  ;;  %v374_v34 = vsel %vm1582_vm0, %v373_v20, %v340_v7 }
  0x96   : > { %s1634_s3 = sld [smem:[#allocation2 + $0x20]]  ;;  %v583_v6 = vstv %s1609_s0 }
  0x97   : > { %v376_v24 = vstv %s2216_s6  ;;  %s2220_s26 = sld [smem:[#allocation22_spill]]  ;;  %v584_v20 = vmul.f32 %v583_v6, %v1487_v1 }
  0x98   : > { %v379_v25 = vstv %s2217_s4  ;;  %s1640_s9 = sld [smem:[#allocation2 + $0x21]]  ;;  %v377_v37 = vsel %vm1582_vm0, %v376_v24, %v343_v11  ;;  %v555_v11 = vmul.f32 %v554_v60, %v1508_v10 }
  0x99   : > { %s2221_s5 = sld [smem:[#allocation23_spill]]  ;;  %v380_v41 = vsel %vm1582_vm0, %v379_v25, %v346_v15  ;;  %v558_v15 = vstv %s1576_s19  ;;  %v587_v24 = vstv %s1617_s25  ;;  %v585_v35 = vadd.f32 %v584_v20, %v581_v18 }
  0x9a   : > { %s1648_s12 = sld [smem:[#allocation2 + $0x22]]  ;;  %v556_v27 = vadd.f32 %v555_v11, %v552_v9  ;;  %v559_v28 = vmul.f32 %v558_v15, %v1525_v19  ;;  %v588_v36 = vmul.f32 %v587_v24, %v1508_v10  ;;  %v591_v40 = vstv %s1623_s22 }
  0x9b   : > { %s2222_s11 = sld [smem:[#allocation24_spill]]  ;;  %v592_v52 = vmul.f32 %v591_v40, %v1525_v19  ;;  %v595_v9 = vstv %s1627_s14 }
  0x9c   : > { %s2223_s8 = sld [smem:[#allocation25_spill]]  ;;  %v589_v51 = vadd.f32 %v588_v36, %v585_v35 }
  0x9d   : > { %s1657_s4 = sld [smem:[#allocation2 + $0x23]]  ;;  %v403_v42 = vstv %s2220_s26 }
  0x9e   : > { %s1664_s30 = sld [smem:[#allocation4 + $0x24]]  ;;  %v404_v57 = vsel %vm1612_vm1, %v403_v42, %v371_v33  ;;  %v472_v33 = vstv %s1479_s1  ;;  %v560_v42 = vadd.f32 %v559_v28, %v556_v27 }
  0x9f   : > { %v406_v45 = vstv %s2221_s5  ;;  %s1668_s27 = sld [smem:[#allocation4 + $0x25]] }
  0xa0   : > { %s1675_s21 = sld [smem:[#allocation4 + $0x26]]  ;;  %v407_v58 = vsel %vm1612_vm1, %v406_v45, %v374_v34  ;;  %v530_v34 = vadd.f32 %v529_v23, %v527_v17 }
  0xa1   : > { %v409_v49 = vstv %s2222_s11  ;;  %s2226_s10 = sld [smem:[#allocation28_spill]] }
  0xa2   : > { %v412_v50 = vstv %s2223_s8  ;;  %s1681_s16 = sld [smem:[#allocation4 + $0x27]]  ;;  %v410_v61 = vsel %vm1612_vm1, %v409_v49, %v377_v37  ;;  %v475_v37 = vstv %s1481_s7  ;;  %vm1775_vm5 = vcmp.lt.f32.partialorder %v530_v34, %v499_v38 }
  0xa3   : > { %s2227_s2 = sld [smem:[#allocation29_spill]]  ;;  %v413_v3 = vsel %vm1612_vm1, %v412_v50, %v380_v41  ;;  %v467_v41 = vsel %vm1693_vm3, 4, %v434_v16  ;;  %v532_v62 = vsel %vm1775_vm5, %v530_v34, %v499_v38 }
  0xa4   : > { %s1689_s15 = sld [smem:[#allocation6 + $0x9]]  ;;  %v613_v31 = vstv %s1664_s30 }
  0xa5   : > { %s2228_s6 = sld [smem:[#allocation30_spill]]  ;;  %v616_v32 = vstv %s1668_s27  ;;  %v614_v43 = vmul.f32 %v613_v31, %v1484_v0 }
  0xa6   : > { %s2229_s26 = sld [smem:[#allocation31_spill]]  ;;  %v617_v44 = vmul.f32 %v616_v32, %v1487_v1  ;;  %v620_v48 = vstv %s1675_s21 }
  0xa7   : > { %s1698_s5 = sld [smem:[#allocation2 + $0x24]]  ;;  %v436_v4 = vstv %s2226_s10  ;;  %v621_v60 = vmul.f32 %v620_v48, %v1508_v10 }
  0xa8   : > { %s1705_s13 = sld [smem:[#allocation2 + $0x25]]  ;;  %v437_v21 = vsel %vm1652_vm2, %v436_v4, %v404_v57  ;;  %v618_v59 = vadd.f32 %v617_v44, %v614_v43  ;;  %v624_v2 = vstv %s1681_s16  ;;  %v593_v4 = vadd.f32 %v592_v52, %v589_v51 }
  0xa9   : > { %v439_v7 = vstv %s2227_s2  ;;  %s1709_s29 = sld [smem:[#allocation2 + $0x26]]  ;;  %v470_v45 = vsel %vm1693_vm3, %v469_v30, %v437_v21  ;;  %v625_v15 = vmul.f32 %v624_v2, %v1525_v19 }
  0xaa   : > { %s1716_s11 = sld [smem:[#allocation2 + $0x27]]  ;;  %v440_v22 = vsel %vm1652_vm2, %v439_v7, %v407_v58  ;;  %v563_v58 = vadd.f32 %v562_v47, %v560_v42  ;;  %v503_v7 = vsel %vm1734_vm4, %v502_v54, %v470_v45  ;;  %v622_v12 = vadd.f32 %v621_v60, %v618_v59 }
  0xab   : > { %v442_v13 = vstv %s2228_s6  ;;  %s1722_s0 = sld [smem:[#allocation4 + $0x28]]  ;;  %v473_v46 = vsel %vm1693_vm3, %v472_v33, %v440_v22  ;;  %v596_v22 = vadd.f32 %v595_v9, %v593_v4  ;;  %v628_v35 = vstv %s1689_s15 }
  0xac   : > { %v445_v14 = vstv %s2229_s26  ;;  %s1730_s19 = sld [smem:[#allocation4 + $0x29]]  ;;  %v443_v25 = vsel %vm1652_vm2, %v442_v13, %v410_v61  ;;  %vm1816_vm6 = vcmp.lt.f32.partialorder %v563_v58, %v532_v62  ;;  %v626_v30 = vadd.f32 %v625_v15, %v622_v12 }
  0xad   : > { %s1739_s17 = sld [smem:[#allocation4 + $0x2a]]  ;;  %v446_v29 = vsel %vm1652_vm2, %v445_v14, %v413_v3  ;;  %v476_v49 = vsel %vm1693_vm3, %v475_v37, %v443_v25  ;;  %v500_v3 = vsel %vm1734_vm4, 5, %v467_v41  ;;  %v565_v26 = vsel %vm1816_vm6, %v563_v58, %v532_v62 }
  0xae   : > { %s1746_s25 = sld [smem:[#allocation4 + $0x2b]]  ;;  %v479_v53 = vsel %vm1693_vm3, %v478_v39, %v446_v29  ;;  %v533_v29 = vsel %vm1775_vm5, 6, %v500_v3  ;;  %vm1857_vm7 = vcmp.lt.f32.partialorder %v596_v22, %v565_v26  ;;  %v601_v4 = vstv %s1634_s3 }
  0xaf   : > { %s1750_s28 = sld [smem:[#allocation6 + $0xa]]  ;;  %v598_v50 = vsel %vm1857_vm7, %v596_v22, %v565_v26  ;;  %v637_v26 = vstv %s1705_s13 }
  0xb0   : > { %s1757_s20 = sld [smem:[#allocation2 + $0x28]] }
  0xb1   : > { %s1763_s1 = sld [smem:[#allocation2 + $0x29]]  ;;  %v646_v55 = vstv %s1722_s0 }
  0xb2   : > { %s2234_s18 = sld [smem:[#allocation32_spill]]  ;;  %v649_v56 = vstv %s1730_s19  ;;  %v647_v5 = vmul.f32 %v646_v55, %v1484_v0 }
  0xb3   : > { %s1771_s7 = sld [smem:[#allocation2 + $0x2a]]  ;;  %v650_v6 = vmul.f32 %v649_v56, %v1487_v1  ;;  %v653_v11 = vstv %s1739_s17 }
  0xb4   : > { %s2235_s22 = sld [smem:[#allocation33_spill]]  ;;  %v654_v24 = vmul.f32 %v653_v11, %v1508_v10  ;;  %v657_v28 = vstv %s1746_s25 }
  0xb5   : > { %s2236_s8 = sld [smem:[#allocation34_spill]]  ;;  %v651_v23 = vadd.f32 %v650_v6, %v647_v5  ;;  %v658_v40 = vmul.f32 %v657_v28, %v1525_v19  ;;  %v661_v58 = vstv %s1750_s28  ;;  %v604_v5 = vstv %s1640_s9 }
  0xb6   : > { %s1780_s30 = sld [smem:[#allocation4 + $0x2c]]  ;;  %v607_v6 = vstv %s1648_s12  ;;  %v640_v28 = vstv %s1709_s29 }
  0xb7   : > { %s1787_s23 = sld [smem:[#allocation4 + $0x2d]]  ;;  %v655_v38 = vadd.f32 %v654_v24, %v651_v23 }
  0xb8   : > { %v505_v57 = vstv %s2234_s18  ;;  %s1791_s27 = sld [smem:[#allocation2 + $0x2b]] }
  0xb9   : > { %s1798_s24 = sld [smem:[#allocation4 + $0x2e]]  ;;  %v506_v8 = vsel %vm1734_vm4, %v505_v57, %v473_v46  ;;  %v629_v46 = vadd.f32 %v628_v35, %v626_v30  ;;  %v659_v54 = vadd.f32 %v658_v40, %v655_v38 }
  0xba   : > { %v508_v61 = vstv %s2235_s22  ;;  %s2239_s21 = sld [smem:[#allocation35_spill]] }
  0xbb   : > { %v511_v63 = vstv %s2236_s8  ;;  %s1804_s10 = sld [smem:[#allocation4 + $0x2f]]  ;;  %v509_v13 = vsel %vm1734_vm4, %v508_v61, %v476_v49  ;;  %v566_v49 = vsel %vm1816_vm6, 7, %v533_v29  ;;  %vm1898_vm8 = vcmp.lt.f32.partialorder %v629_v46, %v598_v50 }
  0xbc   : > { %s2240_s2 = sld [smem:[#allocation36_spill]]  ;;  %v512_v16 = vsel %vm1734_vm4, %v511_v63, %v479_v53  ;;  %v679_v18 = vstv %s1780_s30  ;;  %v599_v12 = vsel %vm1857_vm7, 8, %v566_v49 }
  0xbd   : > { %s1812_s16 = sld [smem:[#allocation6 + $0xb]]  ;;  %v682_v20 = vstv %s1787_s23  ;;  %v680_v31 = vmul.f32 %v679_v18, %v1484_v0  ;;  %v1958_v35 = vsel %vm1898_vm8, 9, %v599_v12 }
  0xbe   : > { %s2241_s6 = sld [smem:[#allocation26_spill]]  ;;  %v683_v32 = vmul.f32 %v682_v20, %v1487_v1 }
  0xbf   : > { %s2242_s26 = sld [smem:[#allocation21_spill]]  ;;  %v686_v36 = vstv %s1798_s24 }
  0xc0   : > { %s1821_s0 = sld [smem:[#allocation2 + $0x2c]]  ;;  %v535_v17 = vstv %s2239_s21  ;;  %v684_v47 = vadd.f32 %v683_v32, %v680_v31  ;;  %v687_v48 = vmul.f32 %v686_v36, %v1508_v10  ;;  %v643_v31 = vstv %s1716_s11 }
  0xc1   : > { %s1828_s14 = sld [smem:[#allocation2 + $0x2d]]  ;;  %v536_v33 = vsel %vm1775_vm5, %v535_v17, %v503_v7  ;;  %v690_v51 = vstv %s1804_s10  ;;  %v610_v7 = vstv %s1657_s4 }
  0xc2   : > { %v538_v21 = vstv %s2240_s2  ;;  %s1832_s19 = sld [smem:[#allocation2 + $0x2e]]  ;;  %v688_v62 = vadd.f32 %v687_v48, %v684_v47  ;;  %v691_v2 = vmul.f32 %v690_v51, %v1525_v19  ;;  %v673_v47 = vstv %s1771_s7 }
  0xc3   : > { %s1839_s17 = sld [smem:[#allocation4 + $0x30]]  ;;  %v539_v34 = vsel %vm1775_vm5, %v538_v21, %v506_v8  ;;  %v662_v8 = vadd.f32 %v661_v58, %v659_v54  ;;  %v634_v21 = vstv %s1698_s5  ;;  %v694_v22 = vstv %s1812_s16 }
  0xc4   : > { %v541_v25 = vstv %s2241_s6  ;;  %s2245_s18 = sld [smem:[#allocation13_spill]]  ;;  %v692_v17 = vadd.f32 %v691_v2, %v688_v62 }
  0xc5   : > { %v544_v27 = vstv %s2242_s26  ;;  %s2246_s22 = sld [smem:[#allocation14_spill]]  ;;  %v542_v37 = vsel %vm1775_vm5, %v541_v25, %v509_v13  ;;  %v631_v13 = vsel %vm1898_vm8, %v629_v46, %v598_v50 }
  0xc6   : > { %s2247_s8 = sld [smem:[#allocation27_spill]]  ;;  %v545_v41 = vsel %vm1775_vm5, %v544_v27, %v512_v16  ;;  %vm1937_vm9 = vcmp.lt.f32.partialorder %v662_v8, %v631_v13  ;;  %v695_v32 = vadd.f32 %v694_v22, %v692_v17 }
  0xc7   : > { %s1845_s30 = sld [smem:[#allocation4 + $0x31]]  ;;  %v664_v36 = vsel %vm1937_vm9, %v662_v8, %v631_v13 }
  0xc8   : > { %s2248_s23 = sld [smem:[#allocation15_spill]]  ;;  %vm1980_vm10 = vcmp.lt.f32.partialorder %v695_v32, %v664_v36 }
  0xc9   : > { %s1853_s25 = sld [smem:[#allocation4 + $0x32]]  ;;  %v712_v52 = vstv %s1839_s17  ;;  %v697_v58 = vsel %vm1980_vm10, %v695_v32, %v664_v36 }
  0xca   : > { %s1862_s21 = sld [smem:[#allocation2 + $0x2f]]  ;;  %v568_v42 = vstv %s2245_s18  ;;  %v713_v55 = vmul.f32 %v712_v52, %v1484_v0  ;;  %v676_v52 = vstv %s1791_s27 }
  0xcb   : > { %v571_v43 = vstv %s2246_s22  ;;  %s1869_s15 = sld [smem:[#allocation4 + $0x33]]  ;;  %v569_v53 = vsel %vm1816_vm6, %v568_v42, %v536_v33 }
  0xcc   : > { %v574_v44 = vstv %s2247_s8  ;;  %s1873_s24 = sld [smem:[#allocation6 + $0xc]]  ;;  %v572_v57 = vsel %vm1816_vm6, %v571_v43, %v539_v34  ;;  %v602_v15 = vsel %vm1857_vm7, %v601_v4, %v569_v53  ;;  %v665_v53 = vsel %vm1937_vm9, 10, %v1958_v35 }
  0xcd   : > { %s1881_s2 = sld [smem:[#allocation2 + $0x30]]  ;;  %v715_v56 = vstv %s1845_s30  ;;  %v575_v61 = vsel %vm1816_vm6, %v574_v44, %v542_v37  ;;  %v605_v16 = vsel %vm1857_vm7, %v604_v5, %v572_v57  ;;  %v635_v38 = vsel %vm1898_vm8, %v634_v21, %v602_v15 }
  0xce   : > { %v577_v45 = vstv %s2248_s23  ;;  %s1887_s6 = sld [smem:[#allocation2 + $0x31]]  ;;  %v716_v59 = vmul.f32 %v715_v56, %v1487_v1  ;;  %v608_v18 = vsel %vm1857_vm7, %v607_v6, %v575_v61  ;;  %v638_v40 = vsel %vm1898_vm8, %v637_v26, %v605_v16 }
  0xcf   : > { %v719_v60 = vstv %s1853_s25  ;;  %s1894_s10 = sld [smem:[#allocation2 + $0x32]]  ;;  %v578_v3 = vsel %vm1816_vm6, %v577_v45, %v545_v41  ;;  %v641_v43 = vsel %vm1898_vm8, %v640_v28, %v608_v18  ;;  %v667_v44 = vstv %s1757_s20 }
  0xd0   : > { %s1903_s26 = sld [smem:[#allocation4 + $0x34]]  ;;  %v717_v9 = vadd.f32 %v716_v59, %v713_v55  ;;  %v720_v11 = vmul.f32 %v719_v60, %v1508_v10  ;;  %v611_v20 = vsel %vm1857_vm7, %v610_v7, %v578_v3  ;;  %v670_v45 = vstv %s1763_s1 }
  0xd1   : > { %s1910_s28 = sld [smem:[#allocation4 + $0x35]]  ;;  %v723_v14 = vstv %s1869_s15  ;;  %v644_v51 = vsel %vm1898_vm8, %v643_v31, %v611_v20  ;;  %v668_v54 = vsel %vm1937_vm9, %v667_v44, %v635_v38  ;;  %v671_v55 = vsel %vm1937_vm9, %v670_v45, %v638_v40 }
  0xd2   : > { %s1914_s17 = sld [smem:[#allocation4 + $0x36]]  ;;  %v721_v24 = vadd.f32 %v720_v11, %v717_v9  ;;  %v724_v25 = vmul.f32 %v723_v14, %v1525_v19  ;;  %v727_v46 = vstv %s1873_s24  ;;  %v674_v57 = vsel %vm1937_vm9, %v673_v47, %v641_v43 }
  0xd3   : > { %s1919_s18 = sld [smem:[#allocation4 + $0x37]]  ;;  %v700_v59 = vstv %s1821_s0  ;;  %v703_v61 = vstv %s1828_s14  ;;  %v677_v3 = vsel %vm1937_vm9, %v676_v52, %v644_v51  ;;  %v706_v7 = vstv %s1832_s19 }
  0xd4   : > { %s1927_s3 = sld [smem:[#allocation2 + $0x33]]  ;;  %v725_v41 = vadd.f32 %v724_v25, %v721_v24  ;;  %v701_v13 = vsel %vm1980_vm10, %v700_v59, %v668_v54  ;;  %v704_v14 = vsel %vm1980_vm10, %v703_v61, %v671_v55  ;;  %v709_v12 = vstv %s1862_s21 }
  0xd5   : > { %s1935_s9 = sld [smem:[#allocation6 + $0xd]]  ;;  %v733_v15 = vstv %s1881_s2  ;;  %v736_v16 = vstv %s1887_s6  ;;  %v707_v21 = vsel %vm1980_vm10, %v706_v7, %v674_v57  ;;  %v739_v23 = vstv %s1894_s10 }
  0xd6   : > { %v745_v27 = vstv %s1903_s26  ;;  %s1943_s12 = sld [smem:[#allocation2 + $0x34]]  ;;  %v728_v56 = vadd.f32 %v727_v46, %v725_v41  ;;  %v698_v24 = vsel %vm1980_vm10, 11, %v665_v53  ;;  %v710_v25 = vsel %vm1980_vm10, %v709_v12, %v677_v3 }
  0xd7   : > { %v746_v29 = vmul.f32 %v745_v27, %v1484_v0  ;;  %v748_v30 = vstv %s1910_s28  ;;  %s1949_s4 = sld [smem:[#allocation2 + $0x35]] }
  0xd8   : > { %v749_v33 = vmul.f32 %v748_v30, %v1487_v1  ;;  %v752_v34 = vstv %s1914_s17  ;;  %s1954_s5 = sld [smem:[#allocation2 + $0x36]]  ;;  %vm2022_vm11 = vcmp.lt.f32.partialorder %v728_v56, %v697_v58 }
  0xd9   : > { %v753_v37 = vmul.f32 %v752_v34, %v1508_v10  ;;  %v756_v39 = vstv %s1919_s18  ;;  %s1964_s13 = sld [smem:[#allocation4 + $0x38]]  ;;  %v730_v22 = vsel %vm2022_vm11, %v728_v56, %v697_v58  ;;  %v734_v26 = vsel %vm2022_vm11, %v733_v15, %v701_v13 }
  0xda   : > { %v750_v42 = vadd.f32 %v749_v33, %v746_v29  ;;  %s1970_s29 = sld [smem:[#allocation4 + $0x39]]  ;;  %v757_v50 = vmul.f32 %v756_v39, %v1525_v19  ;;  %v737_v28 = vsel %vm2022_vm11, %v736_v16, %v704_v14  ;;  %v742_v29 = vstv %s1927_s3 }
  0xdb   : > { %s1977_s11 = sld [smem:[#allocation4 + $0x3a]]  ;;  %v760_v4 = vstv %s1935_s9  ;;  %v740_v31 = vsel %vm2022_vm11, %v739_v23, %v707_v21  ;;  %v731_v43 = vsel %vm2022_vm11, 12, %v698_v24 }
  0xdc   : > { %v754_v49 = vadd.f32 %v753_v37, %v750_v42  ;;  %s1985_s16 = sld [smem:[#allocation4 + $0x3b]]  ;;  %v766_v35 = vstv %s1943_s12 }
  0xdd   : > { %s1990_s20 = sld [smem:[#allocation2 + $0x37]]  ;;  %v769_v36 = vstv %s1949_s4 }
  0xde   : > { %s1999_s1 = sld [smem:[#allocation6 + $0xe]]  ;;  %v758_v63 = vadd.f32 %v757_v50, %v754_v49  ;;  %v772_v38 = vstv %s1954_s5 }
  0xdf   : > { %v778_v60 = vstv %s1964_s13  ;;  %s2007_s7 = sld [smem:[#allocation2 + $0x38]] }
  0xe0   : > { %v779_v62 = vmul.f32 %v778_v60, %v1484_v0  ;;  %v781_v2 = vstv %s1970_s29  ;;  %s2012_s27 = sld [smem:[#allocation2 + $0x39]]  ;;  %v761_v17 = vadd.f32 %v760_v4, %v758_v63 }
  0xe1   : > { %v782_v5 = vmul.f32 %v781_v2, %v1487_v1  ;;  %v785_v6 = vstv %s1977_s11  ;;  %s2019_s0 = sld [smem:[#allocation2 + $0x3a]] }
  0xe2   : > { %v786_v9 = vmul.f32 %v785_v6, %v1508_v10  ;;  %v789_v11 = vstv %s1985_s16  ;;  %s2028_s14 = sld [smem:[#allocation4 + $0x3c]]  ;;  %vm2065_vm12 = vcmp.lt.f32.partialorder %v761_v17, %v730_v22 }
  0xe3   : > { %s2036_s22 = sld [smem:[#allocation4 + $0x3d]]  ;;  %v783_v18 = vadd.f32 %v782_v5, %v779_v62  ;;  %v790_v20 = vmul.f32 %v789_v11, %v1525_v19  ;;  %v763_v44 = vsel %vm2065_vm12, %v761_v17, %v730_v22  ;;  %v775_v46 = vstv %s1990_s20 }
  0xe4   : > { %s2040_s19 = sld [smem:[#allocation4 + $0x3e]]  ;;  %v793_v30 = vstv %s1999_s1  ;;  %v767_v49 = vsel %vm2065_vm12, %v766_v35, %v734_v26  ;;  %v770_v50 = vsel %vm2065_vm12, %v769_v36, %v737_v28  ;;  %v764_v56 = vsel %vm2065_vm12, 13, %v731_v43 }
  0xe5   : > { %s2047_s8 = sld [smem:[#allocation4 + $0x3f]]  ;;  %v787_v27 = vadd.f32 %v786_v9, %v783_v18  ;;  %v799_v51 = vstv %s2007_s7 }
  0xe6   : > { %s2053_s30 = sld [smem:[#allocation2 + $0x3b]]  ;;  %v802_v53 = vstv %s2012_s27 }
  0xe7   : > { %s2061_s23 = sld [smem:[#allocation6 + $0xf]]  ;;  %v791_v33 = vadd.f32 %v790_v20, %v787_v27 }
  0xe8   : > { %v811_v34 = vstv %s2028_s14  ;;  %s2070_s25 = sld [smem:[#allocation2 + $0x3c]] }
  0xe9   : > { %v812_v37 = vmul.f32 %v811_v34, %v1484_v0  ;;  %v814_v39 = vstv %s2036_s22  ;;  %s2076_s21 = sld [smem:[#allocation2 + $0x3d]]  ;;  %v794_v40 = vadd.f32 %v793_v30, %v791_v33 }
  0xea   : > { %v815_v41 = vmul.f32 %v814_v39, %v1487_v1  ;;  %v818_v42 = vstv %s2040_s19  ;;  %s2081_s15 = sld [smem:[#allocation2 + $0x3e]]  ;;  %v743_v1 = vsel %vm2022_vm11, %v742_v29, %v710_v25 }
  0xeb   : > { %v819_v0 = vmul.f32 %v818_v42, %v1508_v10  ;;  %v822_v45 = vstv %s2047_s8  ;;  %s2089_s24 = sld [smem:[#allocation2 + $0x3f]]  ;;  %v773_v10 = vsel %vm2065_vm12, %v772_v38, %v740_v31  ;;  %vm2102_vm13 = vcmp.lt.f32.partialorder %v794_v40, %v763_v44 }
  0xec   : > { %v816_v47 = vadd.f32 %v815_v41, %v812_v37  ;;  %v823_v48 = vmul.f32 %v822_v45, %v1525_v19  ;;  %s2263_s2 = sld [smem:[#allocation12_spill]]  ;;  %v805_v19 = vstv %s2019_s0  ;;  %v776_v57 = vsel %vm2065_vm12, %v775_v46, %v743_v1 }
  0xed   : > { %v826_v55 = vstv %s2061_s23  ;;  %v808_v58 = vstv %s2053_s30  ;;  %v796_v60 = vsel %vm2102_vm13, %v794_v40, %v763_v44  ;;  %v800_v61 = vsel %vm2102_vm13, %v799_v51, %v767_v49  ;;  %s2265_s28 = sld [smem:[#allocation41_spill]] }
  0xee   : > { %v820_v54 = vadd.f32 %v819_v0, %v816_v47  ;;  %v803_v63 = vsel %vm2102_vm13, %v802_v53, %v770_v50  ;;  %v806_v62 = vsel %vm2102_vm13, %v805_v19, %v773_v10  ;;  %v831_v3 = vstv %s2070_s25  ;;  %s2266_s12 = sld [smem:[#allocation42_spill]] }
  0xef   : > { %v834_v4 = vstv %s2076_s21  ;;  %v809_v6 = vsel %vm2102_vm13, %v808_v58, %v776_v57  ;;  %v797_v8 = vsel %vm2102_vm13, 14, %v764_v56 }
  0xf0   : > { %v824_v59 = vadd.f32 %v823_v48, %v820_v54  ;;  %v837_v5 = vstv %s2081_s15 }
  0xf1   : > { %v840_v7 = vstv %s2089_s24 }
  0xf2   : > { %v827_v2 = vadd.f32 %v826_v55, %v824_v59  ;;  %s2264_s6 = sshll.u32 %s2263_s2, 3  ;;  %s1018_s18 = sshll.u32 %s2263_s2, 1 }
  0xf3   : > { %s306_s17 = scalar_lea.vmem %s2265_s28, %s2264_s6 }
  0xf4   : > { %vm828_vm14 = vcmp.lt.f32.partialorder %v827_v2, %v796_v60  ;;  %s313_s4 = scalar_lea.vmem %s2266_s12, %s1018_s18 }
  0xf5   : > { %v832_v9 = vsel %vm828_vm14, %v831_v3, %v800_v61  ;;  %v835_v11 = vsel %vm828_vm14, %v834_v4, %v803_v63  ;;  %v838_v13 = vsel %vm828_vm14, %v837_v5, %v806_v62  ;;  %v841_v14 = vsel %vm828_vm14, %v840_v7, %v809_v6 }
  0xf6   : > { %842 = vst [vmem:[%s306_s17] sm:$0x3] %v832_v9  ;;  %v829_v12 = vsel %vm828_vm14, 15, %v797_v8 }
  0xf7   : > { %843 = vst [vmem:[%s306_s17 + $0x2] sm:$0x3] %v835_v11 }
  0xf8   : > { %844 = vst [vmem:[%s306_s17 + $0x4] sm:$0x3] %v838_v13 }
  0xf9   : > { %845 = vst [vmem:[%s306_s17 + $0x6] sm:$0x3] %v841_v14 }
  0xfa   : > { %846 = vst [vmem:[%s313_s4] sm:$0x3] %v829_v12 }
  0xfb PF: > { %s2267_s5 = sld [smem:[#allocation10_spill]] }
  0xfc   : > { %s2268_s18 = sld [smem:[#allocation9_spill]] }
  0xfd   : > { %s2269_s19 = sld [smem:[#allocation11_spill]] }
 0x101   : > { %s18_s20 = sadd.s32 1, %s2267_s5  }
 0x102   : > { %p15_p8 = scmp.ge.s32.totalorder %s18_s20, 4  }
 0x104   :  { %17 = sbr.rel (!%p15_p8) target bundleno = 10 (0xa), region = 91 }
 0x109   :  { %894 = vsyncpa [#allocation3], 1 }
 0x10a   :  { %896 = vsyncpa [#allocation3 + $0x1], 1 }
 0x10b   :  { %897 = vsyncpa [#allocation5], 1 }

</bundles_post_ra>
